<compile_context>
chip_gen: v6e
topology: v6e:2x2x1
jax: 0.10.0
libtpu: 0.0.40
codegen_flags: <defaults>
</compile_context>

<pallas_src>
import math

import jax
import jax.numpy as jnp
from jax import lax
from jax.experimental import pallas as pl
from jax.experimental.pallas import tpu as pltpu


# ------------------------------- kernel --------------------------------------

def _ln_rows(x2, b, e, t, eps=1e-5):
    """LayerNorm over the E axis of a feature-major (B*E, T) activation.

    Variance via E[x^2] - E[x]^2: two independent sublane (XLU) reductions
    issued back-to-back instead of reduce -> full-tensor subtract -> reduce.
    Numerically safe at small E in f32.
    """
    x3 = x2.reshape(b, e, t)
    mu = jnp.mean(x3, axis=1, keepdims=True)
    msq = jnp.mean(x3 * x3, axis=1, keepdims=True)
    var = msq - mu * mu
    return ((x3 - mu) * lax.rsqrt(var + eps)).reshape(b * e, t)


def _disc_kernel(x_ref, xa_ref, wa_ref, peb_ref, wall_ref, col_ref, out_ref):
    b, t = x_ref.shape            # (B, T)
    e = peb_ref.shape[0]          # E
    be = b * e

    cols = col_ref[...]           # (B*E, 12): packed per-feature column vectors

    def col(j):                   # (B*E, 1); broadcasts over the T lanes
        return cols[:, j:j + 1]

    # --- augment_channel (Linear 2 -> E) + positional encoding, feature-major ---
    wa = wa_ref[...]              # (E, 2): col 0 weights x, col 1 weights x_aug
    h3 = (x_ref[...][:, None, :] * wa[:, 0:1][None, :, :]
          + xa_ref[...][:, None, :] * wa[:, 1:2][None, :, :]
          + peb_ref[...][None, :, :])                        # (B, E, T)
    h2 = h3.reshape(be, t)        # copy-free: E % 8 == 0 (asserted in wrapper)

    # --- fused q,k,v projection: one MXU matmul on block-diag weights ---
    qkv = jnp.dot(wall_ref[0:3 * be, :], h2,
                  preferred_element_type=jnp.float32)        # (3*B*E, T)
    q3 = (qkv[0 * be:1 * be, :] + col(0)).reshape(b, e, t)   # 1/sqrt(E) folded
    k3 = (qkv[1 * be:2 * be, :] + col(1)).reshape(b, e, t)
    v3 = (qkv[2 * be:3 * be, :] + col(2)).reshape(b, e, t)

    # --- single-head attention over the batch axis, streamed per key index ---
    # Never materializes (B, B, E, T) broadcast products (vreg-resident).
    s = [jnp.sum(q3 * k3[bk][None, :, :], axis=1) for bk in range(b)]  # B x (B,T)
    m = s[0]
    for bk in range(1, b):
        m = jnp.maximum(m, s[bk])
    p = [jnp.exp(s[bk] - m) for bk in range(b)]
    denom = p[0]
    for bk in range(1, b):
        denom = denom + p[bk]
    inv = pl.reciprocal(denom, approx=False)                 # exact; EUP slot
    attn3 = (p[0] * inv)[:, None, :] * v3[0][None, :, :]
    for bk in range(1, b):
        attn3 = attn3 + (p[bk] * inv)[:, None, :] * v3[bk][None, :, :]  # (B,E,T)

    # --- attention out-projection ---
    attn2 = jnp.dot(wall_ref[3 * be:4 * be, :], attn3.reshape(be, t),
                    preferred_element_type=jnp.float32) + col(3)

    # --- residual + LayerNorm1 (post-norm) ---
    h1 = _ln_rows(h2 + attn2, b, e, t) * col(6) + col(7)

    # --- feed-forward (dim_feedforward = E), relu ---
    ff = jnp.maximum(
        jnp.dot(wall_ref[4 * be:5 * be, :], h1,
                preferred_element_type=jnp.float32) + col(4), 0.0)
    ff = jnp.dot(wall_ref[5 * be:6 * be, :], ff,
                 preferred_element_type=jnp.float32) + col(5)

    # --- residual + LayerNorm2 ---
    hout = _ln_rows(h1 + ff, b, e, t) * col(8) + col(9)

    # --- fused reduce_channel: mean over T, Linear(E, 1), + bias -> (B, 1) ---
    wred3 = col(10).reshape(b, e, 1)                          # tile(w_red, B)/T
    red_t = jnp.sum(hout.reshape(b, e, t) * wred3, axis=2, keepdims=True)  # (B,E,1)
    red = jnp.sum(red_t, axis=1, keepdims=True)                            # (B,1,1)
    out_ref[...] = red.reshape(b, 1) + cols[0:1, 11:12]       # + b_red


# ------------------------------- wrapper --------------------------------------

def make_positional_encoding(n_tokens, emb_dim):
    position = jnp.arange(n_tokens, dtype=jnp.float32)[:, None]
    div_term = jnp.exp(jnp.arange(0, emb_dim, 2, dtype=jnp.float32)
                       * (-math.log(10000.0) / emb_dim))
    pe = jnp.zeros((n_tokens, emb_dim), jnp.float32)
    pe = pe.at[:, 0::2].set(jnp.sin(position * div_term))
    pe = pe.at[:, 1::2].set(jnp.cos(position * div_term))
    return pe


def init_params(key, emb_dim):
    # Deterministic synthetic init mimicking PyTorch Linear defaults.
    def lin(k, fan_in, shape):
        bound = 1.0 / math.sqrt(fan_in)
        return jax.random.uniform(k, shape, jnp.float32, -bound, bound)

    ks = jax.random.split(key, 16)
    E = emb_dim
    return {
        "w_aug": lin(ks[0], 2, (2, E)),       # Linear(2, E), stored [in, out]
        "b_aug": lin(ks[1], 2, (1, E)),
        "w_q": lin(ks[2], E, (E, E)),         # attention in-proj (nhead=1)
        "b_q": lin(ks[3], E, (1, E)),
        "w_k": lin(ks[4], E, (E, E)),
        "b_k": lin(ks[5], E, (1, E)),
        "w_v": lin(ks[6], E, (E, E)),
        "b_v": lin(ks[7], E, (1, E)),
        "w_out": lin(ks[8], E, (E, E)),       # attention out-proj
        "b_out": lin(ks[9], E, (1, E)),
        "g1": jnp.ones((1, E), jnp.float32),  # LayerNorm1
        "be1": jnp.zeros((1, E), jnp.float32),
        "w1": lin(ks[10], E, (E, E)),         # FFN (dim_feedforward = E)
        "b1": lin(ks[11], E, (1, E)),
        "w2": lin(ks[12], E, (E, E)),
        "b2": lin(ks[13], E, (1, E)),
        "g2": jnp.ones((1, E), jnp.float32),  # LayerNorm2
        "be2": jnp.zeros((1, E), jnp.float32),
        "w_red": lin(ks[14], E, (E, 1)),      # Linear(E, 1)
        "b_red": lin(ks[15], E, (1, 1)),
    }


def prepare_operands(params, B, T):
    """Repack parameters for the feature-major (B*E, T) kernel layout.

    Done ONCE per parameter set (not per forward call).
    """
    E = params["w_aug"].shape[1]
    assert E % 8 == 0, "feature-major layout assumes emb_dim % 8 == 0 (pad E otherwise)"
    scale = 1.0 / math.sqrt(E)
    eye_b = jnp.eye(B, dtype=jnp.float32)

    def bd(w):                  # (E_in, E_out) [in, out]  ->  (B*E_out, B*E_in)
        return jnp.kron(eye_b, w.T)

    wall = jnp.concatenate([
        bd(params["w_q"] * scale), bd(params["w_k"]), bd(params["w_v"]),
        bd(params["w_out"]), bd(params["w1"]), bd(params["w2"])], axis=0)

    def til(v):                 # (1, E) / (E, 1) -> (B*E,), tiled per batch row
        return jnp.tile(jnp.reshape(v, (E,)), B)

    colpack = jnp.stack([
        til(params["b_q"]) * scale, til(params["b_k"]), til(params["b_v"]),
        til(params["b_out"]), til(params["b1"]), til(params["b2"]),
        til(params["g1"]), til(params["be1"]),
        til(params["g2"]), til(params["be2"]),
        til(params["w_red"]) * (1.0 / T),                              # col 10
        jnp.broadcast_to(jnp.reshape(params["b_red"], ()), (B * E,)),  # col 11
    ], axis=1)                                                 # (B*E, 12)

    wa = jnp.transpose(params["w_aug"])                        # (E, 2)
    peb = (jnp.transpose(make_positional_encoding(T, E))
           + jnp.reshape(params["b_aug"], (E, 1)))             # (E, T)
    return wa, peb, wall, colpack


def _forward(x, x_aug, wa, peb, wall, colpack):
    B, T = x.shape

    def full_spec(shape):
        nd = len(shape)
        return pl.BlockSpec(shape, lambda i, _nd=nd: (0,) * _nd)

    operands = (x, x_aug, wa, peb, wall, colpack)
    return pl.pallas_call(
        _disc_kernel,
        out_shape=jax.ShapeDtypeStruct((B, 1), jnp.float32),
        grid=(1,),
        in_specs=[full_spec(op.shape) for op in operands],
        out_specs=full_spec((B, 1)),
        compiler_params=pltpu.CompilerParams(
            dimension_semantics=("arbitrary",),
            vmem_limit_bytes=32 * 1024 * 1024),
    )(*operands)


def make_discriminator(params, B, T):
    """Prepare operands once, return a jitted forward(x, x_aug) -> (B, 1)."""
    prepared = tuple(jax.block_until_ready(a)
                     for a in prepare_operands(params, B, T))

    @jax.jit
    def fwd(x, x_aug):
        return _forward(x, x_aug, *prepared)

    return fwd


# ---------------------------- pure-JAX reference ------------------------------

def reference_forward(x, x_aug, params):
    E = params["w_aug"].shape[1]
    T = x.shape[1]
    isr = jnp.transpose(jnp.stack([x, x_aug], axis=-1), (1, 0, 2))   # (T, B, 2)
    h = isr @ params["w_aug"] + params["b_aug"]
    h = h + make_positional_encoding(T, E)[:, None, :]
    q = h @ params["w_q"] + params["b_q"]
    k = h @ params["w_k"] + params["b_k"]
    v = h @ params["w_v"] + params["b_v"]
    s = jnp.einsum('tqe,tke->tqk', q, k) / jnp.sqrt(jnp.float32(E))
    p = jax.nn.softmax(s, axis=-1)
    a = jnp.einsum('tqk,tke->tqe', p, v) @ params["w_out"] + params["b_out"]

    def ln(z, g, b):
        mu = jnp.mean(z, axis=-1, keepdims=True)
        var = jnp.mean(jnp.square(z - mu), axis=-1, keepdims=True)
        return (z - mu) / jnp.sqrt(var + 1e-5) * g + b

    h1 = ln(h + a, params["g1"], params["be1"])
    ff = jax.nn.relu(h1 @ params["w1"] + params["b1"]) @ params["w2"] + params["b2"]
    h2 = ln(h1 + ff, params["g2"], params["be2"])
    m = jnp.mean(h2, axis=0)                                         # (B, E)
    return m @ params["w_red"] + params["b_red"]                     # (B, 1)


# ----------------------------------- main --------------------------------------

if __name__ == "__main__":
    # Small shapes consistent with the module: n_tokens=128 (instead of 1024),
    # emb_dim=8, n_heads=1, dropout=0.0, batch=4.
    B, T, E = 4, 128, 8
    key = jax.random.PRNGKey(0)
    kx, ka, kp = jax.random.split(key, 3)
    x = jax.random.normal(kx, (B, T), jnp.float32)
    x_aug = jax.random.normal(ka, (B, T), jnp.float32)
    params = init_params(kp, E)

    fwd = make_discriminator(params, B, T)   # prep once, jitted forward
    out = jax.block_until_ready(fwd(x, x_aug))
    assert out.shape == (B, 1)

    ref = reference_forward(x, x_aug, params)
    max_err = float(jnp.max(jnp.abs(out - ref)))
    assert max_err < 5e-3, f"max abs error vs reference: {max_err}"

    print("KERNEL_OK")
</pallas_src>

<mosaic_0001>
module attributes {stable_mosaic.version = 11 : i64} {
  func.func @_disc_kernel(%arg0: i32, %arg1: memref<4x128xf32, #tpu.memory_space<vmem>>, %arg2: memref<4x128xf32, #tpu.memory_space<vmem>>, %arg3: memref<8x2xf32, #tpu.memory_space<vmem>>, %arg4: memref<8x128xf32, #tpu.memory_space<vmem>>, %arg5: memref<192x32xf32, #tpu.memory_space<vmem>>, %arg6: memref<32x12xf32, #tpu.memory_space<vmem>>, %arg7: memref<4x1xf32, #tpu.memory_space<vmem>>) attributes {dimension_semantics = [#tpu.dimension_semantics<arbitrary>], iteration_bounds = array<i64: 1>, scalar_prefetch = 0 : i64, scratch_operands = 0 : i64, tpu.core_type = #tpu.core_type<tc>, window_params = [{pipeline_mode = #tpu.pipeline_mode<synchronous>, transform_indices = @transform_0, window_bounds = array<i64: 4, 128>}, {pipeline_mode = #tpu.pipeline_mode<synchronous>, transform_indices = @transform_1, window_bounds = array<i64: 4, 128>}, {pipeline_mode = #tpu.pipeline_mode<synchronous>, transform_indices = @transform_2, window_bounds = array<i64: 8, 2>}, {pipeline_mode = #tpu.pipeline_mode<synchronous>, transform_indices = @transform_3, window_bounds = array<i64: 8, 128>}, {pipeline_mode = #tpu.pipeline_mode<synchronous>, transform_indices = @transform_4, window_bounds = array<i64: 192, 32>}, {pipeline_mode = #tpu.pipeline_mode<synchronous>, transform_indices = @transform_5, window_bounds = array<i64: 32, 12>}, {pipeline_mode = #tpu.pipeline_mode<synchronous>, transform_indices = @transform_6, window_bounds = array<i64: 4, 1>}]} {
    %c0 = arith.constant 0 : index
    %c0_0 = arith.constant 0 : index
    %0 = vector.load %arg6[%c0, %c0_0] : memref<32x12xf32, #tpu.memory_space<vmem>>, vector<32x12xf32>
    %c0_1 = arith.constant 0 : index
    %c0_2 = arith.constant 0 : index
    %1 = vector.load %arg3[%c0_1, %c0_2] : memref<8x2xf32, #tpu.memory_space<vmem>>, vector<8x2xf32>
    %c0_3 = arith.constant 0 : index
    %c0_4 = arith.constant 0 : index
    %2 = vector.load %arg1[%c0_3, %c0_4] : memref<4x128xf32, #tpu.memory_space<vmem>>, vector<4x128xf32>
    %3 = vector.shape_cast %2 : vector<4x128xf32> to vector<4x1x128xf32>
    %4 = vector.extract_strided_slice %1 {offsets = [0, 0], sizes = [8, 1], strides = [1, 1]} : vector<8x2xf32> to vector<8x1xf32>
    %5 = vector.shape_cast %4 : vector<8x1xf32> to vector<1x8x1xf32>
    %6 = vector.broadcast %3 : vector<4x1x128xf32> to vector<4x8x128xf32>
    %7 = vector.broadcast %5 : vector<1x8x1xf32> to vector<4x8x128xf32>
    %8 = arith.mulf %6, %7 : vector<4x8x128xf32>
    %c0_5 = arith.constant 0 : index
    %c0_6 = arith.constant 0 : index
    %9 = vector.load %arg2[%c0_5, %c0_6] : memref<4x128xf32, #tpu.memory_space<vmem>>, vector<4x128xf32>
    %10 = vector.shape_cast %9 : vector<4x128xf32> to vector<4x1x128xf32>
    %11 = vector.extract_strided_slice %1 {offsets = [0, 1], sizes = [8, 1], strides = [1, 1]} : vector<8x2xf32> to vector<8x1xf32>
    %12 = vector.shape_cast %11 : vector<8x1xf32> to vector<1x8x1xf32>
    %13 = vector.broadcast %10 : vector<4x1x128xf32> to vector<4x8x128xf32>
    %14 = vector.broadcast %12 : vector<1x8x1xf32> to vector<4x8x128xf32>
    %15 = arith.mulf %13, %14 : vector<4x8x128xf32>
    %16 = arith.addf %8, %15 : vector<4x8x128xf32>
    %c0_7 = arith.constant 0 : index
    %c0_8 = arith.constant 0 : index
    %17 = vector.load %arg4[%c0_7, %c0_8] : memref<8x128xf32, #tpu.memory_space<vmem>>, vector<8x128xf32>
    %18 = vector.shape_cast %17 : vector<8x128xf32> to vector<1x8x128xf32>
    %19 = vector.broadcast %18 : vector<1x8x128xf32> to vector<4x8x128xf32>
    %20 = arith.addf %16, %19 : vector<4x8x128xf32>
    %21 = vector.shape_cast %20 : vector<4x8x128xf32> to vector<32x128xf32>
    %c0_9 = arith.constant 0 : index
    %c0_10 = arith.constant 0 : index
    %22 = vector.load %arg5[%c0_9, %c0_10] : memref<192x32xf32, #tpu.memory_space<vmem>>, vector<96x32xf32>
    %cst = arith.constant dense<0.000000e+00> : vector<96x128xf32>
    %23 = tpu.matmul %22, %21, %cst {dimension_numbers = #tpu.dot_dimension_numbers<[1], [0], [0], [1], [0, 0, 1, 1], [], []>} : vector<96x32xf32>, vector<32x128xf32>, vector<96x128xf32> -> vector<96x128xf32>
    %24 = vector.extract_strided_slice %23 {offsets = [0, 0], sizes = [32, 128], strides = [1, 1]} : vector<96x128xf32> to vector<32x128xf32>
    %25 = vector.extract_strided_slice %0 {offsets = [0, 0], sizes = [32, 1], strides = [1, 1]} : vector<32x12xf32> to vector<32x1xf32>
    %26 = vector.broadcast %25 : vector<32x1xf32> to vector<32x128xf32>
    %27 = arith.addf %24, %26 : vector<32x128xf32>
    %28 = vector.shape_cast %27 : vector<32x128xf32> to vector<4x8x128xf32>
    %29 = vector.extract_strided_slice %23 {offsets = [32, 0], sizes = [32, 128], strides = [1, 1]} : vector<96x128xf32> to vector<32x128xf32>
    %30 = vector.extract_strided_slice %0 {offsets = [0, 1], sizes = [32, 1], strides = [1, 1]} : vector<32x12xf32> to vector<32x1xf32>
    %31 = vector.broadcast %30 : vector<32x1xf32> to vector<32x128xf32>
    %32 = arith.addf %29, %31 : vector<32x128xf32>
    %33 = vector.shape_cast %32 : vector<32x128xf32> to vector<4x8x128xf32>
    %34 = vector.extract_strided_slice %23 {offsets = [64, 0], sizes = [32, 128], strides = [1, 1]} : vector<96x128xf32> to vector<32x128xf32>
    %35 = vector.extract_strided_slice %0 {offsets = [0, 2], sizes = [32, 1], strides = [1, 1]} : vector<32x12xf32> to vector<32x1xf32>
    %36 = vector.broadcast %35 : vector<32x1xf32> to vector<32x128xf32>
    %37 = arith.addf %34, %36 : vector<32x128xf32>
    %38 = vector.shape_cast %37 : vector<32x128xf32> to vector<4x8x128xf32>
    %39 = vector.extract_strided_slice %33 {offsets = [0, 0, 0], sizes = [1, 8, 128], strides = [1, 1, 1]} : vector<4x8x128xf32> to vector<1x8x128xf32>
    %40 = vector.shape_cast %39 : vector<1x8x128xf32> to vector<8x128xf32>
    %41 = vector.shape_cast %40 : vector<8x128xf32> to vector<1x8x128xf32>
    %42 = vector.broadcast %41 : vector<1x8x128xf32> to vector<4x8x128xf32>
    %43 = arith.mulf %28, %42 : vector<4x8x128xf32>
    %cst_11 = arith.constant dense<0.000000e+00> : vector<4x128xf32>
    %44 = vector.multi_reduction <add>, %43, %cst_11 [1] : vector<4x8x128xf32> to vector<4x128xf32>
    %45 = vector.extract_strided_slice %33 {offsets = [1, 0, 0], sizes = [1, 8, 128], strides = [1, 1, 1]} : vector<4x8x128xf32> to vector<1x8x128xf32>
    %46 = vector.shape_cast %45 : vector<1x8x128xf32> to vector<8x128xf32>
    %47 = vector.shape_cast %46 : vector<8x128xf32> to vector<1x8x128xf32>
    %48 = vector.broadcast %47 : vector<1x8x128xf32> to vector<4x8x128xf32>
    %49 = arith.mulf %28, %48 : vector<4x8x128xf32>
    %cst_12 = arith.constant dense<0.000000e+00> : vector<4x128xf32>
    %50 = vector.multi_reduction <add>, %49, %cst_12 [1] : vector<4x8x128xf32> to vector<4x128xf32>
    %51 = vector.extract_strided_slice %33 {offsets = [2, 0, 0], sizes = [1, 8, 128], strides = [1, 1, 1]} : vector<4x8x128xf32> to vector<1x8x128xf32>
    %52 = vector.shape_cast %51 : vector<1x8x128xf32> to vector<8x128xf32>
    %53 = vector.shape_cast %52 : vector<8x128xf32> to vector<1x8x128xf32>
    %54 = vector.broadcast %53 : vector<1x8x128xf32> to vector<4x8x128xf32>
    %55 = arith.mulf %28, %54 : vector<4x8x128xf32>
    %cst_13 = arith.constant dense<0.000000e+00> : vector<4x128xf32>
    %56 = vector.multi_reduction <add>, %55, %cst_13 [1] : vector<4x8x128xf32> to vector<4x128xf32>
    %57 = vector.extract_strided_slice %33 {offsets = [3, 0, 0], sizes = [1, 8, 128], strides = [1, 1, 1]} : vector<4x8x128xf32> to vector<1x8x128xf32>
    %58 = vector.shape_cast %57 : vector<1x8x128xf32> to vector<8x128xf32>
    %59 = vector.shape_cast %58 : vector<8x128xf32> to vector<1x8x128xf32>
    %60 = vector.broadcast %59 : vector<1x8x128xf32> to vector<4x8x128xf32>
    %61 = arith.mulf %28, %60 : vector<4x8x128xf32>
    %cst_14 = arith.constant dense<0.000000e+00> : vector<4x128xf32>
    %62 = vector.multi_reduction <add>, %61, %cst_14 [1] : vector<4x8x128xf32> to vector<4x128xf32>
    %63 = arith.maximumf %44, %50 : vector<4x128xf32>
    %64 = arith.maximumf %63, %56 : vector<4x128xf32>
    %65 = arith.maximumf %64, %62 : vector<4x128xf32>
    %66 = arith.subf %44, %65 : vector<4x128xf32>
    %67 = math.exp %66 : vector<4x128xf32>
    %68 = arith.subf %50, %65 : vector<4x128xf32>
    %69 = math.exp %68 : vector<4x128xf32>
    %70 = arith.subf %56, %65 : vector<4x128xf32>
    %71 = math.exp %70 : vector<4x128xf32>
    %72 = arith.subf %62, %65 : vector<4x128xf32>
    %73 = math.exp %72 : vector<4x128xf32>
    %74 = arith.addf %67, %69 : vector<4x128xf32>
    %75 = arith.addf %74, %71 : vector<4x128xf32>
    %76 = arith.addf %75, %73 : vector<4x128xf32>
    %77 = tpu.reciprocal %76 : vector<4x128xf32> -> vector<4x128xf32>
    %78 = arith.mulf %67, %77 : vector<4x128xf32>
    %79 = vector.shape_cast %78 : vector<4x128xf32> to vector<4x1x128xf32>
    %80 = vector.extract_strided_slice %38 {offsets = [0, 0, 0], sizes = [1, 8, 128], strides = [1, 1, 1]} : vector<4x8x128xf32> to vector<1x8x128xf32>
    %81 = vector.shape_cast %80 : vector<1x8x128xf32> to vector<8x128xf32>
    %82 = vector.shape_cast %81 : vector<8x128xf32> to vector<1x8x128xf32>
    %83 = vector.broadcast %79 : vector<4x1x128xf32> to vector<4x8x128xf32>
    %84 = vector.broadcast %82 : vector<1x8x128xf32> to vector<4x8x128xf32>
    %85 = arith.mulf %83, %84 : vector<4x8x128xf32>
    %86 = arith.mulf %69, %77 : vector<4x128xf32>
    %87 = vector.shape_cast %86 : vector<4x128xf32> to vector<4x1x128xf32>
    %88 = vector.extract_strided_slice %38 {offsets = [1, 0, 0], sizes = [1, 8, 128], strides = [1, 1, 1]} : vector<4x8x128xf32> to vector<1x8x128xf32>
    %89 = vector.shape_cast %88 : vector<1x8x128xf32> to vector<8x128xf32>
    %90 = vector.shape_cast %89 : vector<8x128xf32> to vector<1x8x128xf32>
    %91 = vector.broadcast %87 : vector<4x1x128xf32> to vector<4x8x128xf32>
    %92 = vector.broadcast %90 : vector<1x8x128xf32> to vector<4x8x128xf32>
    %93 = arith.mulf %91, %92 : vector<4x8x128xf32>
    %94 = arith.addf %85, %93 : vector<4x8x128xf32>
    %95 = arith.mulf %71, %77 : vector<4x128xf32>
    %96 = vector.shape_cast %95 : vector<4x128xf32> to vector<4x1x128xf32>
    %97 = vector.extract_strided_slice %38 {offsets = [2, 0, 0], sizes = [1, 8, 128], strides = [1, 1, 1]} : vector<4x8x128xf32> to vector<1x8x128xf32>
    %98 = vector.shape_cast %97 : vector<1x8x128xf32> to vector<8x128xf32>
    %99 = vector.shape_cast %98 : vector<8x128xf32> to vector<1x8x128xf32>
    %100 = vector.broadcast %96 : vector<4x1x128xf32> to vector<4x8x128xf32>
    %101 = vector.broadcast %99 : vector<1x8x128xf32> to vector<4x8x128xf32>
    %102 = arith.mulf %100, %101 : vector<4x8x128xf32>
    %103 = arith.addf %94, %102 : vector<4x8x128xf32>
    %104 = arith.mulf %73, %77 : vector<4x128xf32>
    %105 = vector.shape_cast %104 : vector<4x128xf32> to vector<4x1x128xf32>
    %106 = vector.extract_strided_slice %38 {offsets = [3, 0, 0], sizes = [1, 8, 128], strides = [1, 1, 1]} : vector<4x8x128xf32> to vector<1x8x128xf32>
    %107 = vector.shape_cast %106 : vector<1x8x128xf32> to vector<8x128xf32>
    %108 = vector.shape_cast %107 : vector<8x128xf32> to vector<1x8x128xf32>
    %109 = vector.broadcast %105 : vector<4x1x128xf32> to vector<4x8x128xf32>
    %110 = vector.broadcast %108 : vector<1x8x128xf32> to vector<4x8x128xf32>
    %111 = arith.mulf %109, %110 : vector<4x8x128xf32>
    %112 = arith.addf %103, %111 : vector<4x8x128xf32>
    %c96 = arith.constant 96 : index
    %c0_15 = arith.constant 0 : index
    %113 = vector.load %arg5[%c96, %c0_15] : memref<192x32xf32, #tpu.memory_space<vmem>>, vector<32x32xf32>
    %114 = vector.shape_cast %112 : vector<4x8x128xf32> to vector<32x128xf32>
    %cst_16 = arith.constant dense<0.000000e+00> : vector<32x128xf32>
    %115 = tpu.matmul %113, %114, %cst_16 {dimension_numbers = #tpu.dot_dimension_numbers<[1], [0], [0], [1], [0, 0, 1, 1], [], []>} : vector<32x32xf32>, vector<32x128xf32>, vector<32x128xf32> -> vector<32x128xf32>
    %116 = vector.extract_strided_slice %0 {offsets = [0, 3], sizes = [32, 1], strides = [1, 1]} : vector<32x12xf32> to vector<32x1xf32>
    %117 = vector.broadcast %116 : vector<32x1xf32> to vector<32x128xf32>
    %118 = arith.addf %115, %117 : vector<32x128xf32>
    %119 = arith.addf %21, %118 : vector<32x128xf32>
    %120 = vector.shape_cast %119 : vector<32x128xf32> to vector<4x8x128xf32>
    %cst_17 = arith.constant dense<0.000000e+00> : vector<4x128xf32>
    %121 = vector.multi_reduction <add>, %120, %cst_17 [1] : vector<4x8x128xf32> to vector<4x128xf32>
    %122 = vector.shape_cast %121 : vector<4x128xf32> to vector<4x1x128xf32>
    %cst_18 = arith.constant 8.000000e+00 : f32
    %123 = vector.broadcast %cst_18 : f32 to vector<4x1x128xf32>
    %124 = arith.divf %122, %123 : vector<4x1x128xf32>
    %125 = arith.mulf %120, %120 : vector<4x8x128xf32>
    %cst_19 = arith.constant dense<0.000000e+00> : vector<4x128xf32>
    %126 = vector.multi_reduction <add>, %125, %cst_19 [1] : vector<4x8x128xf32> to vector<4x128xf32>
    %127 = vector.shape_cast %126 : vector<4x128xf32> to vector<4x1x128xf32>
    %cst_20 = arith.constant 8.000000e+00 : f32
    %128 = vector.broadcast %cst_20 : f32 to vector<4x1x128xf32>
    %129 = arith.divf %127, %128 : vector<4x1x128xf32>
    %130 = arith.mulf %124, %124 : vector<4x1x128xf32>
    %131 = arith.subf %129, %130 : vector<4x1x128xf32>
    %132 = vector.broadcast %124 : vector<4x1x128xf32> to vector<4x8x128xf32>
    %133 = arith.subf %120, %132 : vector<4x8x128xf32>
    %cst_21 = arith.constant 9.99999974E-6 : f32
    %134 = vector.broadcast %cst_21 : f32 to vector<4x1x128xf32>
    %135 = arith.addf %131, %134 : vector<4x1x128xf32>
    %136 = math.rsqrt %135 : vector<4x1x128xf32>
    %137 = vector.broadcast %136 : vector<4x1x128xf32> to vector<4x8x128xf32>
    %138 = arith.mulf %133, %137 : vector<4x8x128xf32>
    %139 = vector.shape_cast %138 : vector<4x8x128xf32> to vector<32x128xf32>
    %140 = vector.extract_strided_slice %0 {offsets = [0, 6], sizes = [32, 1], strides = [1, 1]} : vector<32x12xf32> to vector<32x1xf32>
    %141 = vector.broadcast %140 : vector<32x1xf32> to vector<32x128xf32>
    %142 = arith.mulf %139, %141 : vector<32x128xf32>
    %143 = vector.extract_strided_slice %0 {offsets = [0, 7], sizes = [32, 1], strides = [1, 1]} : vector<32x12xf32> to vector<32x1xf32>
    %144 = vector.broadcast %143 : vector<32x1xf32> to vector<32x128xf32>
    %145 = arith.addf %142, %144 : vector<32x128xf32>
    %c128 = arith.constant 128 : index
    %c0_22 = arith.constant 0 : index
    %146 = vector.load %arg5[%c128, %c0_22] : memref<192x32xf32, #tpu.memory_space<vmem>>, vector<32x32xf32>
    %cst_23 = arith.constant dense<0.000000e+00> : vector<32x128xf32>
    %147 = tpu.matmul %146, %145, %cst_23 {dimension_numbers = #tpu.dot_dimension_numbers<[1], [0], [0], [1], [0, 0, 1, 1], [], []>} : vector<32x32xf32>, vector<32x128xf32>, vector<32x128xf32> -> vector<32x128xf32>
    %148 = vector.extract_strided_slice %0 {offsets = [0, 4], sizes = [32, 1], strides = [1, 1]} : vector<32x12xf32> to vector<32x1xf32>
    %149 = vector.broadcast %148 : vector<32x1xf32> to vector<32x128xf32>
    %150 = arith.addf %147, %149 : vector<32x128xf32>
    %cst_24 = arith.constant 0.000000e+00 : f32
    %151 = vector.broadcast %cst_24 : f32 to vector<32x128xf32>
    %152 = arith.maximumf %150, %151 : vector<32x128xf32>
    %c160 = arith.constant 160 : index
    %c0_25 = arith.constant 0 : index
    %153 = vector.load %arg5[%c160, %c0_25] : memref<192x32xf32, #tpu.memory_space<vmem>>, vector<32x32xf32>
    %cst_26 = arith.constant dense<0.000000e+00> : vector<32x128xf32>
    %154 = tpu.matmul %153, %152, %cst_26 {dimension_numbers = #tpu.dot_dimension_numbers<[1], [0], [0], [1], [0, 0, 1, 1], [], []>} : vector<32x32xf32>, vector<32x128xf32>, vector<32x128xf32> -> vector<32x128xf32>
    %155 = vector.extract_strided_slice %0 {offsets = [0, 5], sizes = [32, 1], strides = [1, 1]} : vector<32x12xf32> to vector<32x1xf32>
    %156 = vector.broadcast %155 : vector<32x1xf32> to vector<32x128xf32>
    %157 = arith.addf %154, %156 : vector<32x128xf32>
    %158 = arith.addf %145, %157 : vector<32x128xf32>
    %159 = vector.shape_cast %158 : vector<32x128xf32> to vector<4x8x128xf32>
    %cst_27 = arith.constant dense<0.000000e+00> : vector<4x128xf32>
    %160 = vector.multi_reduction <add>, %159, %cst_27 [1] : vector<4x8x128xf32> to vector<4x128xf32>
    %161 = vector.shape_cast %160 : vector<4x128xf32> to vector<4x1x128xf32>
    %cst_28 = arith.constant 8.000000e+00 : f32
    %162 = vector.broadcast %cst_28 : f32 to vector<4x1x128xf32>
    %163 = arith.divf %161, %162 : vector<4x1x128xf32>
    %164 = arith.mulf %159, %159 : vector<4x8x128xf32>
    %cst_29 = arith.constant dense<0.000000e+00> : vector<4x128xf32>
    %165 = vector.multi_reduction <add>, %164, %cst_29 [1] : vector<4x8x128xf32> to vector<4x128xf32>
    %166 = vector.shape_cast %165 : vector<4x128xf32> to vector<4x1x128xf32>
    %cst_30 = arith.constant 8.000000e+00 : f32
    %167 = vector.broadcast %cst_30 : f32 to vector<4x1x128xf32>
    %168 = arith.divf %166, %167 : vector<4x1x128xf32>
    %169 = arith.mulf %163, %163 : vector<4x1x128xf32>
    %170 = arith.subf %168, %169 : vector<4x1x128xf32>
    %171 = vector.broadcast %163 : vector<4x1x128xf32> to vector<4x8x128xf32>
    %172 = arith.subf %159, %171 : vector<4x8x128xf32>
    %cst_31 = arith.constant 9.99999974E-6 : f32
    %173 = vector.broadcast %cst_31 : f32 to vector<4x1x128xf32>
    %174 = arith.addf %170, %173 : vector<4x1x128xf32>
    %175 = math.rsqrt %174 : vector<4x1x128xf32>
    %176 = vector.broadcast %175 : vector<4x1x128xf32> to vector<4x8x128xf32>
    %177 = arith.mulf %172, %176 : vector<4x8x128xf32>
    %178 = vector.shape_cast %177 : vector<4x8x128xf32> to vector<32x128xf32>
    %179 = vector.extract_strided_slice %0 {offsets = [0, 8], sizes = [32, 1], strides = [1, 1]} : vector<32x12xf32> to vector<32x1xf32>
    %180 = vector.broadcast %179 : vector<32x1xf32> to vector<32x128xf32>
    %181 = arith.mulf %178, %180 : vector<32x128xf32>
    %182 = vector.extract_strided_slice %0 {offsets = [0, 9], sizes = [32, 1], strides = [1, 1]} : vector<32x12xf32> to vector<32x1xf32>
    %183 = vector.broadcast %182 : vector<32x1xf32> to vector<32x128xf32>
    %184 = arith.addf %181, %183 : vector<32x128xf32>
    %185 = vector.extract_strided_slice %0 {offsets = [0, 10], sizes = [32, 1], strides = [1, 1]} : vector<32x12xf32> to vector<32x1xf32>
    %186 = vector.shape_cast %185 : vector<32x1xf32> to vector<4x8x1xf32>
    %187 = vector.shape_cast %184 : vector<32x128xf32> to vector<4x8x128xf32>
    %188 = vector.broadcast %186 : vector<4x8x1xf32> to vector<4x8x128xf32>
    %189 = arith.mulf %187, %188 : vector<4x8x128xf32>
    %cst_32 = arith.constant dense<0.000000e+00> : vector<4x8xf32>
    %190 = vector.multi_reduction <add>, %189, %cst_32 [2] : vector<4x8x128xf32> to vector<4x8xf32>
    %191 = vector.shape_cast %190 : vector<4x8xf32> to vector<4x8x1xf32>
    %cst_33 = arith.constant dense<0.000000e+00> : vector<4x1xf32>
    %192 = vector.multi_reduction <add>, %191, %cst_33 [1] : vector<4x8x1xf32> to vector<4x1xf32>
    %193 = vector.shape_cast %192 : vector<4x1xf32> to vector<4x1x1xf32>
    %194 = vector.shape_cast %193 : vector<4x1x1xf32> to vector<4x1xf32>
    %195 = vector.extract_strided_slice %0 {offsets = [0, 11], sizes = [1, 1], strides = [1, 1]} : vector<32x12xf32> to vector<1x1xf32>
    %196 = vector.broadcast %195 : vector<1x1xf32> to vector<4x1xf32>
    %197 = arith.addf %194, %196 : vector<4x1xf32>
    %c0_34 = arith.constant 0 : index
    %c0_35 = arith.constant 0 : index
    %198 = vector.load %arg7[%c0_34, %c0_35] : memref<4x1xf32, #tpu.memory_space<vmem>>, vector<4x1xf32>
    tpu.vector_store %arg7[%c0_34, %c0_35], %197 {strides = array<i32>} : memref<4x1xf32, #tpu.memory_space<vmem>>, vector<4x1xf32>,
    return
  }
  func.func @transform_0(%arg0: i32) -> (i32, i32) {
    %c0_i32 = arith.constant 0 : i32
    %c0_i32_0 = arith.constant 0 : i32
    %c0_i32_1 = arith.constant 0 : i32
    return %c0_i32, %c0_i32_0 : i32, i32
  }
  func.func @transform_1(%arg0: i32) -> (i32, i32) {
    %c0_i32 = arith.constant 0 : i32
    %c0_i32_0 = arith.constant 0 : i32
    %c0_i32_1 = arith.constant 0 : i32
    return %c0_i32, %c0_i32_0 : i32, i32
  }
  func.func @transform_2(%arg0: i32) -> (i32, i32) {
    %c0_i32 = arith.constant 0 : i32
    %c0_i32_0 = arith.constant 0 : i32
    %c0_i32_1 = arith.constant 0 : i32
    return %c0_i32, %c0_i32_0 : i32, i32
  }
  func.func @transform_3(%arg0: i32) -> (i32, i32) {
    %c0_i32 = arith.constant 0 : i32
    %c0_i32_0 = arith.constant 0 : i32
    %c0_i32_1 = arith.constant 0 : i32
    return %c0_i32, %c0_i32_0 : i32, i32
  }
  func.func @transform_4(%arg0: i32) -> (i32, i32) {
    %c0_i32 = arith.constant 0 : i32
    %c0_i32_0 = arith.constant 0 : i32
    %c0_i32_1 = arith.constant 0 : i32
    return %c0_i32, %c0_i32_0 : i32, i32
  }
  func.func @transform_5(%arg0: i32) -> (i32, i32) {
    %c0_i32 = arith.constant 0 : i32
    %c0_i32_0 = arith.constant 0 : i32
    %c0_i32_1 = arith.constant 0 : i32
    return %c0_i32, %c0_i32_0 : i32, i32
  }
  func.func @transform_6(%arg0: i32) -> (i32, i32) {
    %c0_i32 = arith.constant 0 : i32
    %c0_i32_0 = arith.constant 0 : i32
    %c0_i32_1 = arith.constant 0 : i32
    return %c0_i32, %c0_i32_0 : i32, i32
  }
}

</mosaic_0001>

<bundles_post_ra>
// kernel: fwd.1
= control target key start
LH: loop header
LB: loop body
LE: loop exit
PB: predicated region body
PF: predicated region fallthrough
CT: control target
= control target key end

     0   :  { %11 = vsyncpa [#allocation3], 0  ;;  %s2081_s0 = inlined_call_operand.hbm [shape: f32[4,128], index: 0, kind: input, shape index: {}]   ;;  %s2082_s1 = inlined_call_operand.hbm [shape: f32[4,128], index: 1, kind: input, shape index: {}]   ;;  %s2083_s2 = inlined_call_operand.hbm [shape: f32[8,2], index: 2, kind: input, shape index: {}]   ;;  %s2084_s3 = inlined_call_operand.hbm [shape: f32[8,128], index: 3, kind: input, shape index: {}]   ;;  %s2085_s4 = inlined_call_operand.hbm [shape: f32[192,32], index: 4, kind: input, shape index: {}]   ;;  %s2086_s5 = inlined_call_operand.hbm [shape: f32[32,12], index: 5, kind: input, shape index: {}]   ;;  %s2087_s6 = inlined_call_operand.vmem [shape: f32[4,1], index: 6, kind: output, shape index: {}]  }
   0x1   :  { %12 = vsyncpa [#allocation5], 0 }
   0x2   :  { %13 = vsyncpa [#allocation8], 0 }
   0x3   :  { %14 = vsyncpa [#allocation11], 0  ;;  %s1760_s21 = smov [#allocation4]   ;;  %s1761_s23 = smov [#allocation7]  }
   0x4   :  { %s31_s22 = sshll.u32 %s1760_s21, 4  ;;  %s51_s24 = sshll.u32 %s1761_s23, 4  ;;  %s32_s22 = int_to_ptr.vmem [resolvable:$true] %s31_s22  ;;  %s52_s24 = int_to_ptr.vmem [resolvable:$true] %s51_s24 }
   0x5   :  { %s1640_s25 = scalar_lea.vmem %s32_s22, 64  ;;  %p1645_p1 = scmp.lt.s32.totalorder %s32_s22, %s32_s22 }
   0x6   :  { %p1641_p0 = scmp.ne.s32.totalorder %s32_s22, %s1640_s25  ;;  %p1646_p2 = scmp.lt.s32.totalorder %s1640_s25, %s1640_s25 }
   0x8   :  { %p1647_p3 = por %p1646_p2, %p1645_p1 }
   0xa   :  { %p1648_p4 = pnand %p1647_p3, %p1641_p0 }
   0xc   :  { %1651 = shalt.err (!%p1648_p4)
}
   0xd   :  { %34 = dma.hbm_to_vmem [thread:$0]  %s2082_s1, 64, %s32_s22, [#allocation5]  }
   0xe   :  { %s1660_s28 = scalar_lea.vmem %s52_s24, 128  ;;  %p1665_p6 = scmp.lt.s32.totalorder %s52_s24, %s52_s24 }
   0xf   :  { %p1661_p5 = scmp.ne.s32.totalorder %s52_s24, %s1660_s28  ;;  %p1666_p7 = scmp.lt.s32.totalorder %s1660_s28, %s1660_s28 }
  0x11   :  { %p1667_p8 = por %p1666_p7, %p1665_p6 }
  0x13   :  { %p1668_p9 = pnand %p1667_p8, %p1661_p5 }
  0x15   :  { %1671 = shalt.err (!%p1668_p9)
}
  0x16   :  { %54 = dma.hbm_to_vmem [thread:$0]  %s2084_s3, 128, %s52_s24, [#allocation8]  }
  0x17   :  { %s1762_s7 = smov [#allocation2]   ;;  %s1763_s9 = smov [#allocation6]  }
  0x18   :  { %s21_s8 = sshll.u32 %s1762_s7, 4  ;;  %s41_s10 = sshll.u32 %s1763_s9, 4  ;;  %s22_s8 = int_to_ptr.vmem [resolvable:$true] %s21_s8  ;;  %s42_s10 = int_to_ptr.vmem [resolvable:$true] %s41_s10 }
  0x19   :  { %s1680_s11 = scalar_lea.vmem %s22_s8, 64  ;;  %p1685_p11 = scmp.lt.s32.totalorder %s22_s8, %s22_s8 }
  0x1a   :  { %p1681_p10 = scmp.ne.s32.totalorder %s22_s8, %s1680_s11  ;;  %p1686_p12 = scmp.lt.s32.totalorder %s1680_s11, %s1680_s11 }
  0x1c   :  { %p1687_p13 = por %p1686_p12, %p1685_p11 }
  0x1e   :  { %p1688_p0 = pnand %p1687_p13, %p1681_p10 }
  0x20   :  { %1691 = shalt.err (!%p1688_p0)
}
  0x21   :  { %24 = dma.hbm_to_vmem [thread:$0]  %s2081_s0, 64, %s22_s8, [#allocation3]  }
  0x22   :  { %s1700_s13 = scalar_lea.vmem %s42_s10, 128  ;;  %p1705_p2 = scmp.lt.s32.totalorder %s42_s10, %s42_s10 }
  0x23   :  { %p1701_p1 = scmp.ne.s32.totalorder %s42_s10, %s1700_s13  ;;  %p1706_p3 = scmp.lt.s32.totalorder %s1700_s13, %s1700_s13 }
  0x25   :  { %p1707_p4 = por %p1706_p3, %p1705_p2 }
  0x27   :  { %p1708_p5 = pnand %p1707_p4, %p1701_p1 }
  0x29   :  { %1711 = shalt.err (!%p1708_p5)
}
  0x2a   :  { %44 = dma.hbm_to_vmem [thread:$0]  %s2083_s2, 128, %s42_s10, [#allocation5]  }
  0x2b   :  { %s1764_s15 = smov [#allocation9]  }
  0x2c   :  { %s60_s16 = sshll.u32 %s1764_s15, 4  ;;  %s61_s16 = int_to_ptr.vmem [resolvable:$true] %s60_s16 }
  0x2d   :  { %s1720_s17 = scalar_lea.vmem %s61_s16, 3072  ;;  %p1725_p7 = scmp.lt.s32.totalorder %s61_s16, %s61_s16 }
  0x2e   :  { %p1721_p6 = scmp.ne.s32.totalorder %s61_s16, %s1720_s17  ;;  %p1726_p8 = scmp.lt.s32.totalorder %s1720_s17, %s1720_s17 }
  0x30   :  { %p1727_p9 = por %p1726_p8, %p1725_p7 }
  0x32   :  { %p1728_p10 = pnand %p1727_p9, %p1721_p6 }
  0x34   :  { %1731 = shalt.err (!%p1728_p10)
}
  0x35   :  { %s1765_s0 = smov 128   ;;  %s1766_s18 = smov 8  }
  0x36   :  { %66 = dma.hbm_to_vmem [thread:$0]  %s2085_s4, 3072, %s61_s16, [#allocation8], %s1765_s0, %s1765_s0, %s1766_s18  }
  0x37   :  { %s1767_s21 = smov [#allocation10]  }
  0x38   :  { %s72_s22 = sshll.u32 %s1767_s21, 4  ;;  %s73_s22 = int_to_ptr.vmem [resolvable:$true] %s72_s22 }
  0x39   :  { %s1740_s2 = scalar_lea.vmem %s73_s22, 512  ;;  %p1745_p12 = scmp.lt.s32.totalorder %s73_s22, %s73_s22 }
  0x3a   :  { %p1741_p11 = scmp.ne.s32.totalorder %s73_s22, %s1740_s2  ;;  %p1746_p13 = scmp.lt.s32.totalorder %s1740_s2, %s1740_s2 }
  0x3c   :  { %p1747_p0 = por %p1746_p13, %p1745_p12 }
  0x3e   :  { %p1748_p1 = pnand %p1747_p0, %p1741_p11 }
  0x40   :  { %1751 = shalt.err (!%p1748_p1)
}
  0x41   :  { %78 = dma.hbm_to_vmem [thread:$0]  %s2086_s5, 512, %s73_s22, [#allocation11], %s1765_s0, %s1765_s0, %s1766_s18  }
  0x42   :  { %1752 = dma.done.wait [#allocation3], 64  }
  0x43   :  { %1753 = vsyncadd [#allocation3], 4294967232 }
  0x44   :  { %1754 = dma.done.wait [#allocation5], 192  }
  0x45   :  { %1755 = vsyncadd [#allocation5], 4294967104 }
  0x46   :  { %1756 = dma.done.wait [#allocation8], 3200  }
  0x47   :  { %1757 = vsyncadd [#allocation8], 4294964096 }
  0x48   :  { %1758 = dma.done.wait [#allocation11], 512  }
  0x49   :  { %1759 = vsyncadd [#allocation11], 4294966784  ;;  %v1768_v0 = vmov 0   ;;  %v101_v1 = vld [vmem:[#allocation6] sm:$0xff]  ;;  %v1769_v2 = vmov 1   ;;  %v220_v3 = vld [vmem:[#allocation9] sm:$0xff]  ;;  %v115_v11 = vlaneseq }
  0x4a   :  { %1545 = vset.pattern.permute.xlu0 %v1768_v0  ;;  %1547 = vset.pattern.permute.xlu1 %v1768_v0  ;;  %vm232_vm0 = vcmask 261120   ;;  %v1835_v4 = vld [vmem:[#allocation10 + $0x18] sm:$0xff]  ;;  %v1838_v5 = vld [vmem:[#allocation10] sm:$0xff]  ;;  %v1840_v6 = vld [vmem:[#allocation10 + $0x10] sm:$0xff]  ;;  %v1770_v8 = vmov 2   ;;  %s1780_s4 = smov 117  }
  0x4b   :  { %150 = vperm.xlu0 %1545, %v101_v1   ;;  %1464 = vmatprep.mubr.msk.f32.mxu0 %vm232_vm0, %v220_v3  ;;  %v1844_v7 = vld [vmem:[#allocation10 + $0x8] sm:$0xff]  ;;  %v1771_v9 = vmov 1966171168   ;;  %v116_v13 = vshrl.u32 %v115_v11, 7  ;;  %v215_v43 = vld [vmem:[#allocation7] sm:$0xff]  ;;  %v222_v56 = vld [vmem:[#allocation9 + $0x10] sm:$0xff] }
  0x4c   :  { %411 = vperm.xlu1 %1547, %v1835_v4   ;;  %v113_v10 = vunpack.c.l.s4 %v1771_v9  ;;  %v1390_v14 = vld.sshfl [vmem:[#allocation2] sm:$0x33 pattern:$0x75316420]  ;;  %v223_v57 = vld [vmem:[#allocation9 + $0x18] sm:$0xff]  ;;  %v224_v58 = vld [vmem:[#allocation9 + $0x20] sm:$0xff] }
  0x4d   :  { %v1391_v15 = vld.sshfl [vmem:[#allocation4] sm:$0x33 pattern:$0x75316420]  ;;  %v111_v17 = vcombine.high %v1390_v14, %v1390_v14  ;;  %v1855_v24 = vsub.s32 0, %v116_v13  ;;  %v226_v60 = vld [vmem:[#allocation9 + $0x30] sm:$0xff] }
  0x4e   :  { %v114_v12 = vunpack.c.0.s8 %v113_v10  ;;  %v166_v18 = vcombine.high %v1391_v15, %v1391_v15  ;;  %v221_v55 = vld [vmem:[#allocation9 + $0x8] sm:$0xff]  ;;  %v227_v61 = vld [vmem:[#allocation9 + $0x38] sm:$0xff]  ;;  %v228_v62 = vld [vmem:[#allocation9 + $0x40] sm:$0xff]  ;;  %v1772_v11 = vmov 3   ;;  %vm1371_vm1 = vcmask 1041409  }
  0x4f   :  { %1546 = vset.pattern.permute.xlu0 %v1769_v2  ;;  %v225_v59 = vld [vmem:[#allocation9 + $0x28] sm:$0xff]  ;;  %v690_v9 = vld [vmem:[#allocation9 + $0x60] sm:$0xff]  ;;  %vm1374_vm2 = vcmask 1042434   ;;  %vm1377_vm3 = vcmask 1043459   ;;  %vm1380_vm4 = vcmask 3072  }
  0x50   :  { %204 = vperm.xlu0 %1546, %v101_v1   ;;  %1548 = vset.pattern.permute.xlu1 %v1769_v2  ;;  %v117_v16 = vsub.s32 %v114_v12, %v116_v13  ;;  %v229_v63 = vld [vmem:[#allocation9 + $0x48] sm:$0xff]  ;;  %v231_v1 = vld [vmem:[#allocation9 + $0x58] sm:$0xff] }
  0x51   :  { %419 = vperm.xlu1 %1548, %v1838_v5   ;;  %1490 = vmatprep.mubr.msk.f32.mxu1 %vm232_vm0, %v690_v9 }
  0x52   :  { %v118_v19 = vrot.slane %v1390_v14, %v117_v16  ;;  %v125_v20 = vrot.slane %v111_v17, %v117_v16  ;;  %v173_v21 = vrot.slane %v1391_v15, %v117_v16  ;;  %v180_v22 = vrot.slane %v166_v18, %v117_v16 }
  0x53   :  { %v1773_v16 = vmov 6  }
  0x54   :  { %1549 = vset.pattern.permute.xlu0 %v1768_v0  ;;  %v126_v23 = vcombine.high %v118_v19, %v118_v19  ;;  %v127_v25 = vcombine.high %v125_v20, %v125_v20  ;;  %v181_v26 = vcombine.high %v173_v21, %v173_v21  ;;  %v182_v27 = vcombine.high %v180_v22, %v180_v22 }
  0x55   :  { %406 = vperm.xlu0 %1549, %v1840_v6   ;;  %423 = vperm.xlu1 %1548, %v1844_v7   ;;  %v190_v31 = vrot.slane %v180_v22, %v1855_v24  ;;  %v135_v34 = vrot.slane %v125_v20, %v1855_v24  ;;  %v186_v35 = vrot.slane %v173_v21, %v1855_v24 }
  0x56   :  { %v139_v29 = vrot.slane %v126_v23, %v1855_v24  ;;  %v143_v30 = vrot.slane %v127_v25, %v1855_v24  ;;  %v194_v32 = vrot.slane %v181_v26, %v1855_v24  ;;  %v198_v33 = vrot.slane %v182_v27, %v1855_v24 }
  0x57   :  { %v131_v36 = vrot.slane %v118_v19, %v1855_v24  ;;  %v1774_v27 = vmov 7  }
  0x59   :  { %1551 = vset.pattern.permute.xlu0 %v1769_v2  ;;  %427 = vperm.xlu1 %1548, %v1840_v6  }
  0x5a   :  { %431 = vperm.xlu0 %1551, %v1835_v4  }
  0x5d   :  { %1550 = vset.pattern.permute.xlu1 %v1768_v0  ;;  %v230_v0 = vld [vmem:[#allocation9 + $0x50] sm:$0xff] }
  0x5e   :  { %1553 = vset.pattern.permute.xlu0 %v1770_v8  ;;  %401 = vperm.xlu1 %1550, %v1844_v7  }
  0x5f   :  { %443 = vperm.xlu0 %1553, %v1844_v7  }
  0x62   :  { %396 = vperm.xlu1 %1550, %v1838_v5  }
  0x63   :  { %1554 = vset.pattern.permute.xlu0 %v1772_v11 }
  0x64   :  { %707 = vperm.xlu0 %1554, %v1835_v4  }
  0x66   :  { %1552 = vset.pattern.permute.xlu1 %v1770_v8 }
  0x67   :  { %439 = vperm.xlu1 %1552, %v1838_v5  }
  0x68   :  { %695 = vperm.xlu0 %1554, %v1838_v5  }
  0x6b   :  { %447 = vperm.xlu1 %1552, %v1840_v6  }
  0x6c   :  { %1557 = vset.pattern.permute.xlu0 %v1773_v16 }
  0x6d   :  { %905 = vperm.xlu0 %1557, %v1840_v6  }
  0x6f   :  { %451 = vperm.xlu1 %1552, %v1835_v4  }
  0x71   :  { %1560 = vset.pattern.permute.xlu0 %v1774_v27 }
  0x72   :  { %925 = vperm.xlu0 %1560, %v1840_v6  }
  0x73   :  { %1555 = vset.pattern.permute.xlu1 %v1772_v11 }
  0x74   :  { %703 = vperm.xlu1 %1555, %v1840_v6  }
  0x76   :  { %917 = vperm.xlu0 %1560, %v1838_v5  }
  0x78   :  { %699 = vperm.xlu1 %1555, %v1844_v7  }
  0x7c   :  { %1556 = vset.pattern.permute.xlu1 %v1773_v16 }
  0x7d   :  { %909 = vperm.xlu1 %1556, %v1835_v4  }
  0x81   :  { %1558 = vset.pattern.permute.xlu1 %v1774_v27 }
  0x82   :  { %929 = vperm.xlu1 %1558, %v1835_v4  }
  0x86   :  { %1559 = vset.pattern.permute.xlu1 %v1773_v16 }
  0x87   :  { %901 = vperm.xlu1 %1559, %v1844_v7  }
  0x8b   :  { %897 = vperm.xlu1 %1559, %v1838_v5  }
  0x8f   :  { %1561 = vset.pattern.permute.xlu1 %v1774_v27 }
  0x90   :  { %921 = vperm.xlu1 %1561, %v1844_v7  }
  0xc6   :  { %v151_v28 = vpop.permute.xlu0 %150 }
  0xc7   :  { %v155_v37 = vmul.f32 %v151_v28, %v139_v29  ;;  %v156_v39 = vmul.f32 %v151_v28, %v143_v30  ;;  %v154_v44 = vmul.f32 %v151_v28, %v135_v34  ;;  %v153_v48 = vmul.f32 %v151_v28, %v131_v36  ;;  %v412_v2 = vpop.permute.xlu1 %411 }
  0xcb   :  { %v205_v38 = vpop.permute.xlu0 %204 }
  0xcc   :  { %v208_v40 = vmul.f32 %v205_v38, %v190_v31  ;;  %v209_v41 = vmul.f32 %v205_v38, %v194_v32  ;;  %v210_v42 = vmul.f32 %v205_v38, %v198_v33  ;;  %v207_v45 = vmul.f32 %v205_v38, %v186_v35  ;;  %v420_v3 = vpop.permute.xlu1 %419 }
  0xce   :  { %v214_v46 = vadd.f32 %v210_v42, %v156_v39  ;;  %v213_v47 = vadd.f32 %v209_v41, %v155_v37  ;;  %v212_v50 = vadd.f32 %v208_v40, %v154_v44  ;;  %v211_v52 = vadd.f32 %v207_v45, %v153_v48 }
  0xd0   :  { %v1865_v49 = vadd.f32 %v215_v43, %v214_v46  ;;  %v1868_v51 = vadd.f32 %v215_v43, %v213_v47  ;;  %v1872_v53 = vadd.f32 %v215_v43, %v212_v50  ;;  %v1876_v54 = vadd.f32 %v215_v43, %v211_v52  ;;  %v424_v8 = vpop.permute.xlu1 %423  ;;  %v407_v19 = vpop.permute.xlu0 %406 }
  0xd2   :  { %1456 = vmatprep.subr.mxu0 %v1865_v49 }
  0xd3   :  { %1457 = vmatpush3.msra.mxu0 %v1865_v49 }
  0xd4   :  { %1458 = vmatprep.subr.mxu0 %v1868_v51  ;;  %v1893_v10 = vpop.permute.xlu1 %427 }
  0xd5   :  { %1459 = vmatpush3.msra.mxu0 %v1868_v51  ;;  %v432_v16 = vpop.permute.xlu0 %431 }
  0xd6   :  { %1460 = vmatprep.subr.mxu0 %v1872_v53 }
  0xd7   :  { %1461 = vmatpush3.msra.mxu0 %v1872_v53 }
  0xd8   :  { %1462 = vmatprep.subr.mxu0 %v1876_v54 }
  0xd9   :  { %1463 = vmatpush3.msra.mxu0 %v1876_v54  ;;  %v402_v12 = vpop.permute.xlu1 %401 }
  0xda   :  { %1465 = vmatmul.mubr.msk.f32.vlgmr.msra.gmra.mxu0 %vm232_vm0, %v221_v55 }
  0xdb   :  { %1467 = vmatprep.mubr.msk.f32.mxu0 %vm232_vm0, %v222_v56 }
  0xdd   :  { %v397_v17 = vpop.permute.xlu1 %396 }
  0xde   :  { %1468 = vmatmul.mubr.msk.f32.gmra.mxu0 %vm232_vm0, %v223_v57 }
  0xdf   :  { %1470 = vmatprep.mubr.msk.f32.mxu0 %vm232_vm0, %v224_v58 }
  0xe2   :  { %1471 = vmatmul.mubr.msk.f32.gmra.mxu0 %vm232_vm0, %v225_v59 }
  0xe3   :  { %1473 = vmatprep.mubr.msk.f32.mxu0 %vm232_vm0, %v226_v60 }
  0xe6   :  { %1474 = vmatmul.mubr.msk.f32.gmra.mxu0 %vm232_vm0, %v227_v61 }
  0xe7   :  { %1476 = vmatprep.mubr.msk.f32.mxu0 %vm232_vm0, %v228_v62 }
  0xea   :  { %1477 = vmatmul.mubr.msk.f32.gmra.mxu0 %vm232_vm0, %v229_v63 }
  0xeb   :  { %1479 = vmatprep.mubr.msk.f32.mxu0 %vm232_vm0, %v230_v0 }
  0xee   :  { %1480 = vmatmul.mubr.msk.f32.gmra.mxu0 %vm232_vm0, %v231_v1 }
 0x19a   :  { %v1466_v13 = vpop.f32.mrf.mxu0 }
 0x19b   :  { %v1901_v20 = vadd.f32 %v1466_v13, %v402_v12 }
 0x19c   :  { %v335_v14 = vpop.f32.mrf.mxu0 }
 0x19d   :  { %v1903_v21 = vadd.f32 %v397_v17, %v335_v14 }
 0x19e   :  { %v1469_v15 = vpop.f32.mrf.mxu0 }
 0x19f   :  { %v1905_v23 = vadd.f32 %v1469_v15, %v412_v2 }
 0x1a0   :  { %v345_v18 = vpop.f32.mrf.mxu0 }
 0x1a1   :  { %v1907_v25 = vadd.f32 %v407_v19, %v345_v18 }
 0x1a2   :  { %v1472_v22 = vpop.f32.mrf.mxu0 }
 0x1a3   :  { %v435_v26 = vadd.f32 %v1472_v22, %v424_v8 }
 0x1a4   :  { %v355_v28 = vpop.f32.mrf.mxu0 }
 0x1a5   :  { %v486_v29 = vmul.f32 %v435_v26, %v1903_v21  ;;  %v487_v30 = vmul.f32 %v435_v26, %v1901_v20  ;;  %v488_v31 = vmul.f32 %v435_v26, %v1907_v25  ;;  %v489_v32 = vmul.f32 %v435_v26, %v1905_v23 }
 0x1a6   :  { %v434_v33 = vadd.f32 %v420_v3, %v355_v28  ;;  %v1475_v2 = vpop.f32.mrf.mxu0 }
 0x1a7   :  { %v490_v34 = vrot.slane %v486_v29, 4  ;;  %v496_v35 = vrot.slane %v487_v30, 4  ;;  %v502_v36 = vrot.slane %v488_v31, 4  ;;  %v508_v37 = vrot.slane %v489_v32, 4 }
 0x1a8   :  { %v458_v38 = vmul.f32 %v434_v33, %v1903_v21  ;;  %v459_v39 = vmul.f32 %v434_v33, %v1901_v20  ;;  %v460_v40 = vmul.f32 %v434_v33, %v1907_v25  ;;  %v461_v41 = vmul.f32 %v434_v33, %v1905_v23  ;;  %v365_v17 = vpop.f32.mrf.mxu0 }
 0x1a9   :  { %v491_v42 = vadd.f32 %v490_v34, %v486_v29  ;;  %v497_v43 = vadd.f32 %v496_v35, %v487_v30  ;;  %v503_v44 = vadd.f32 %v502_v36, %v488_v31  ;;  %v509_v45 = vadd.f32 %v508_v37, %v489_v32 }
 0x1aa   :  { %v462_v46 = vrot.slane %v458_v38, 4  ;;  %v468_v47 = vrot.slane %v459_v39, 4  ;;  %v474_v48 = vrot.slane %v460_v40, 4  ;;  %v480_v50 = vrot.slane %v461_v41, 4 }
 0x1ab   :  { %v492_v52 = vrot.slane %v491_v42, 2  ;;  %v498_v55 = vrot.slane %v497_v43, 2  ;;  %v504_v56 = vrot.slane %v503_v44, 2  ;;  %v510_v57 = vrot.slane %v509_v45, 2 }
 0x1ac   :  { %v463_v58 = vadd.f32 %v462_v46, %v458_v38  ;;  %v469_v59 = vadd.f32 %v468_v47, %v459_v39  ;;  %v475_v60 = vadd.f32 %v474_v48, %v460_v40  ;;  %v481_v61 = vadd.f32 %v480_v50, %v461_v41 }
 0x1ad   :  { %v493_v62 = vadd.f32 %v492_v52, %v491_v42  ;;  %v499_v63 = vadd.f32 %v498_v55, %v497_v43  ;;  %v505_v0 = vadd.f32 %v504_v56, %v503_v44  ;;  %v511_v1 = vadd.f32 %v510_v57, %v509_v45 }
 0x1ae   :  { %v464_v3 = vrot.slane %v463_v58, 2  ;;  %v470_v8 = vrot.slane %v469_v59, 2  ;;  %v476_v9 = vrot.slane %v475_v60, 2  ;;  %v482_v11 = vrot.slane %v481_v61, 2 }
 0x1af   :  { %v494_v12 = vrot.slane %v493_v62, 1  ;;  %v500_v13 = vrot.slane %v499_v63, 1  ;;  %v506_v14 = vrot.slane %v505_v0, 1  ;;  %v512_v15 = vrot.slane %v511_v1, 1 }
 0x1b0   :  { %v465_v18 = vadd.f32 %v464_v3, %v463_v58  ;;  %v471_v19 = vadd.f32 %v470_v8, %v469_v59  ;;  %v477_v22 = vadd.f32 %v476_v9, %v475_v60  ;;  %v483_v26 = vadd.f32 %v482_v11, %v481_v61 }
 0x1b1   :  { %v1923_v28 = vadd.f32 %v494_v12, %v493_v62  ;;  %v437_v29 = vadd.f32 %v1475_v2, %v432_v16  ;;  %v1925_v30 = vadd.f32 %v500_v13, %v499_v63  ;;  %v1927_v31 = vadd.f32 %v506_v14, %v505_v0 }
 0x1b2   :  { %v1929_v32 = vadd.f32 %v512_v15, %v511_v1  ;;  %v436_v33 = vadd.f32 %v1893_v10, %v365_v17  ;;  %v466_v37 = vrot.slane %v465_v18, 1  ;;  %v472_v38 = vrot.slane %v471_v19, 1 }
 0x1b3   :  { %v542_v34 = vmul.f32 %v437_v29, %v1903_v21  ;;  %v543_v27 = vmul.f32 %v437_v29, %v1901_v20  ;;  %v544_v35 = vmul.f32 %v437_v29, %v1907_v25  ;;  %v545_v36 = vmul.f32 %v437_v29, %v1905_v23 }
 0x1b4   :  { %v478_v39 = vrot.slane %v477_v22, 1  ;;  %v484_v40 = vrot.slane %v483_v26, 1  ;;  %v514_v45 = vmul.f32 %v436_v33, %v1903_v21  ;;  %v515_v10 = vmul.f32 %v436_v33, %v1901_v20 }
 0x1b5   :  { %v546_v41 = vrot.slane %v542_v34, 4  ;;  %v552_v42 = vrot.slane %v543_v27, 4  ;;  %v558_v43 = vrot.slane %v544_v35, 4  ;;  %v564_v44 = vrot.slane %v545_v36, 4 }
 0x1b6   :  { %v516_v46 = vmul.f32 %v436_v33, %v1907_v25  ;;  %v517_v47 = vmul.f32 %v436_v33, %v1905_v23  ;;  %v518_v56 = vrot.slane %v514_v45, 4  ;;  %v524_v57 = vrot.slane %v515_v10, 4 }
 0x1b7   :  { %v547_v48 = vadd.f32 %v546_v41, %v542_v34  ;;  %v553_v50 = vadd.f32 %v552_v42, %v543_v27  ;;  %v559_v52 = vadd.f32 %v558_v43, %v544_v35  ;;  %v565_v55 = vadd.f32 %v564_v44, %v545_v36 }
 0x1b8   :  { %v530_v58 = vrot.slane %v516_v46, 4  ;;  %v536_v59 = vrot.slane %v517_v47, 4  ;;  %v519_v0 = vadd.f32 %v518_v56, %v514_v45  ;;  %v525_v21 = vadd.f32 %v524_v57, %v515_v10 }
 0x1b9   :  { %v548_v60 = vrot.slane %v547_v48, 2  ;;  %v554_v61 = vrot.slane %v553_v50, 2  ;;  %v560_v62 = vrot.slane %v559_v52, 2  ;;  %v566_v63 = vrot.slane %v565_v55, 2 }
 0x1ba   :  { %v531_v1 = vadd.f32 %v530_v58, %v516_v46  ;;  %v537_v20 = vadd.f32 %v536_v59, %v517_v47  ;;  %v1940_v2 = vadd.f32 %v466_v37, %v465_v18  ;;  %v520_v8 = vrot.slane %v519_v0, 2 }
 0x1bb   :  { %v549_v25 = vadd.f32 %v548_v60, %v547_v48  ;;  %v555_v23 = vadd.f32 %v554_v61, %v553_v50  ;;  %v561_v3 = vadd.f32 %v560_v62, %v559_v52  ;;  %v526_v9 = vrot.slane %v525_v21, 2 }
 0x1bc   :  { %v532_v11 = vrot.slane %v531_v1, 2  ;;  %v538_v12 = vrot.slane %v537_v20, 2  ;;  %v1942_v13 = vadd.f32 %v472_v38, %v471_v19  ;;  %v1944_v14 = vadd.f32 %v478_v39, %v477_v22 }
 0x1bd   :  { %v1946_v15 = vadd.f32 %v484_v40, %v483_v26  ;;  %v567_v16 = vadd.f32 %v566_v63, %v565_v55  ;;  %v521_v17 = vadd.f32 %v520_v8, %v519_v0  ;;  %v527_v29 = vadd.f32 %v526_v9, %v525_v21 }
 0x1be   :  { %v533_v33 = vadd.f32 %v532_v11, %v531_v1  ;;  %v539_v34 = vadd.f32 %v538_v12, %v537_v20  ;;  %v570_v18 = vmax.f32 %v1940_v2, %v1923_v28  ;;  %v550_v27 = vrot.slane %v549_v25, 1 }
 0x1bf   :  { %v556_v35 = vrot.slane %v555_v23, 1  ;;  %v562_v36 = vrot.slane %v561_v3, 1  ;;  %v522_v37 = vrot.slane %v521_v17, 1  ;;  %v528_v41 = vrot.slane %v527_v29, 1 }
 0x1c0   :  { %v534_v42 = vrot.slane %v533_v33, 1  ;;  %v540_v19 = vrot.slane %v539_v34, 1  ;;  %v571_v22 = vmax.f32 %v1942_v13, %v1925_v30  ;;  %v572_v26 = vmax.f32 %v1944_v14, %v1927_v31 }
 0x1c1   :  { %v573_v38 = vmax.f32 %v1946_v15, %v1929_v32  ;;  %v568_v39 = vrot.slane %v567_v16, 1  ;;  %v523_v40 = vadd.f32 %v522_v37, %v521_v17  ;;  %v529_v43 = vadd.f32 %v528_v41, %v527_v29 }
 0x1c2   :  { %v535_v44 = vadd.f32 %v534_v42, %v533_v33  ;;  %v541_v45 = vadd.f32 %v540_v19, %v539_v34  ;;  %v551_v10 = vadd.f32 %v550_v27, %v549_v25  ;;  %v557_v46 = vadd.f32 %v556_v35, %v555_v23 }
 0x1c3   :  { %v563_v47 = vadd.f32 %v562_v36, %v561_v3  ;;  %v574_v48 = vmax.f32 %v570_v18, %v523_v40  ;;  %v575_v50 = vmax.f32 %v571_v22, %v529_v43  ;;  %v569_v56 = vadd.f32 %v568_v39, %v567_v16 }
 0x1c4   :  { %v576_v52 = vmax.f32 %v572_v26, %v535_v44  ;;  %v577_v55 = vmax.f32 %v573_v38, %v541_v45 }
 0x1c5   :  { %v578_v57 = vmax.f32 %v574_v48, %v551_v10  ;;  %v579_v58 = vmax.f32 %v575_v50, %v557_v46 }
 0x1c6   :  { %v580_v59 = vmax.f32 %v576_v52, %v563_v47  ;;  %v581_v60 = vmax.f32 %v577_v55, %v569_v56 }
 0x1c7   :  { %v594_v61 = vsub.f32 %v1923_v28, %v578_v57  ;;  %v595_v62 = vsub.f32 %v1925_v30, %v579_v58  ;;  %v606_v0 = vsub.f32 %v523_v40, %v578_v57  ;;  %v607_v1 = vsub.f32 %v529_v43, %v579_v58 }
 0x1c8   :  { %v596_v63 = vsub.f32 %v1927_v31, %v580_v59  ;;  %v608_v25 = vsub.f32 %v535_v44, %v580_v59  ;;  %v609_v3 = vsub.f32 %v541_v45, %v581_v60  ;;  %v618_v9 = vsub.f32 %v551_v10, %v578_v57 }
 0x1c9   :  { %v598_v21 = vmul.f32 1.442695, %v594_v61  ;;  %v600_v20 = vmul.f32 1.442695, %v595_v62  ;;  %v610_v8 = vmul.f32 1.442695, %v606_v0  ;;  %v582_v12 = vsub.f32 %v1940_v2, %v578_v57 }
 0x1ca   :  { %v602_v23 = vmul.f32 1.442695, %v596_v63  ;;  %v612_v11 = vmul.f32 1.442695, %v607_v1  ;;  %v614_v16 = vmul.f32 1.442695, %v608_v25  ;;  %v583_v28 = vsub.f32 %v1942_v13, %v579_v58 }
 0x1cb   :  { %1572 = vpow2.f32 %v598_v21  ;;  %v616_v30 = vmul.f32 1.442695, %v609_v3  ;;  %v584_v31 = vsub.f32 %v1944_v14, %v580_v59  ;;  %v622_v17 = vmul.f32 1.442695, %v618_v9  ;;  %v1478_v21 = vpop.f32.mrf.mxu0 }
 0x1cc   :  { %1574 = vpow2.f32 %v600_v20  ;;  %v585_v29 = vsub.f32 %v1946_v15, %v581_v60  ;;  %v586_v33 = vmul.f32 1.442695, %v582_v12  ;;  %v597_v34 = vsub.f32 %v1929_v32, %v581_v60  ;;  %v440_v20 = vpop.permute.xlu1 %439 }
 0x1cd   :  { %1576 = vpow2.f32 %v602_v23  ;;  %v619_v18 = vsub.f32 %v557_v46, %v579_v58  ;;  %v588_v27 = vmul.f32 1.442695, %v583_v28  ;;  %v620_v2 = vsub.f32 %v563_v47, %v580_v59  ;;  %v375_v25 = vpop.f32.mrf.mxu0 }
 0x1ce   :  { %1578 = vpow2.f32 %v610_v8  ;;  %v590_v35 = vmul.f32 1.442695, %v584_v31  ;;  %v592_v13 = vmul.f32 1.442695, %v585_v29  ;;  %v604_v36 = vmul.f32 1.442695, %v597_v34  ;;  %v444_v8 = vpop.permute.xlu0 %443 }
 0x1cf   :  { %1580 = vpow2.f32 %v612_v11  ;;  %v621_v37 = vsub.f32 %v569_v56, %v581_v60  ;;  %v624_v14 = vmul.f32 1.442695, %v619_v18  ;;  %v626_v41 = vmul.f32 1.442695, %v620_v2  ;;  %v1481_v23 = vpop.f32.mrf.mxu0 }
 0x1d0   :  { %1582 = vpow2.f32 %v614_v16  ;;  %v448_v3 = vpop.permute.xlu1 %447  ;;  %v454_v12 = vadd.f32 %v440_v20, %v375_v25 }
 0x1d1   :  { %1584 = vpow2.f32 %v616_v30  ;;  %v628_v15 = vmul.f32 1.442695, %v621_v37  ;;  %v385_v16 = vpop.f32.mrf.mxu0 }
 0x1d2   :  { %1586 = vpow2.f32 %v622_v17  ;;  %v455_v17 = vadd.f32 %v1478_v21, %v444_v8 }
 0x1d3   :  { %1588 = vpow2.f32 %v586_v33 }
 0x1d4   :  { %1590 = vpow2.f32 %v588_v27 }
 0x1d5   :  { %1592 = vpow2.f32 %v590_v35  ;;  %v456_v35 = vadd.f32 %v448_v3, %v385_v16  ;;  %v1775_v16 = vmov 4  }
 0x1d6   :  { %1594 = vpow2.f32 %v592_v13  ;;  %1562 = vset.pattern.permute.xlu1 %v1775_v16  ;;  %1563 = vset.pattern.permute.xlu0 %v1775_v16 }
 0x1d7   :  { %1596 = vpow2.f32 %v604_v36  ;;  %953 = vperm.xlu1 %1562, %v1835_v4   ;;  %949 = vperm.xlu0 %1563, %v1840_v6  }
 0x1d8   :  { %v1573_v42 = vpop.eup %1572  ;;  %1598 = vpow2.f32 %v624_v14 }
 0x1d9   :  { %v1575_v32 = vpop.eup %1574  ;;  %1600 = vpow2.f32 %v626_v41  ;;  %v452_v41 = vpop.permute.xlu1 %451 }
 0x1da   :  { %v1577_v19 = vpop.eup %1576  ;;  %1602 = vpow2.f32 %v628_v15 }
 0x1db   :  { %v1964_v22 = vpop.eup %1578  ;;  %945 = vperm.xlu1 %1562, %v1844_v7  }
 0x1dc   :  { %v1581_v26 = vpop.eup %1580 }
 0x1dd   :  { %v1583_v38 = vpop.eup %1582 }
 0x1de   :  { %v1585_v39 = vpop.eup %1584 }
 0x1df   :  { %v1966_v40 = vpop.eup %1586  ;;  %941 = vperm.xlu1 %1562, %v1838_v5  }
 0x1e0   :  { %v1589_v43 = vpop.eup %1588 }
 0x1e1   :  { %v1591_v44 = vpop.eup %1590  ;;  %v630_v45 = vadd.f32 %v1589_v43, %v1573_v42 }
 0x1e2   :  { %v1593_v10 = vpop.eup %1592  ;;  %v631_v46 = vadd.f32 %v1591_v44, %v1575_v32 }
 0x1e3   :  { %v1595_v47 = vpop.eup %1594  ;;  %v632_v48 = vadd.f32 %v1593_v10, %v1577_v19  ;;  %v634_v50 = vadd.f32 %v1964_v22, %v630_v45 }
 0x1e4   :  { %v1597_v52 = vpop.eup %1596  ;;  %v635_v55 = vadd.f32 %v1581_v26, %v631_v46 }
 0x1e5   :  { %v1599_v56 = vpop.eup %1598  ;;  %v636_v57 = vadd.f32 %v1583_v38, %v632_v48  ;;  %v638_v58 = vadd.f32 %v1966_v40, %v634_v50  ;;  %v633_v59 = vadd.f32 %v1597_v52, %v1595_v47 }
 0x1e6   :  { %v1601_v60 = vpop.eup %1600  ;;  %v639_v61 = vadd.f32 %v1599_v56, %v635_v55 }
 0x1e7   :  { %v640_v62 = vadd.f32 %v1601_v60, %v636_v57  ;;  %1604 = vrcp.f32 %v638_v58  ;;  %v637_v63 = vadd.f32 %v1585_v39, %v633_v59  ;;  %v1603_v0 = vpop.eup %1602 }
 0x1e8   :  { %1606 = vrcp.f32 %v639_v61 }
 0x1e9   :  { %1608 = vrcp.f32 %v640_v62  ;;  %v641_v1 = vadd.f32 %v1603_v0, %v637_v63 }
 0x1eb   :  { %1610 = vrcp.f32 %v641_v1 }
 0x1f4   :  { %v1605_v9 = vpop.eup %1604 }
 0x1f5   :  { %v1607_v11 = vpop.eup %1606  ;;  %v646_v30 = vmul.f32 %v1605_v9, %v1589_v43  ;;  %v654_v34 = vmul.f32 %v1605_v9, %v1573_v42  ;;  %v457_v42 = vadd.f32 %v1481_v23, %v452_v41  ;;  %v666_v57 = vmul.f32 %v1605_v9, %v1964_v22 }
 0x1f6   :  { %v1609_v28 = vpop.eup %1608  ;;  %v647_v31 = vmul.f32 %v1607_v11, %v1591_v44  ;;  %v655_v29 = vmul.f32 %v1607_v11, %v1575_v32  ;;  %v667_v43 = vmul.f32 %v1607_v11, %v1581_v26  ;;  %v679_v63 = vmul.f32 %v1607_v11, %v1599_v56  ;;  %v691_v11 = vld [vmem:[#allocation9 + $0x68] sm:$0xff] }
 0x1f7   :  { %v648_v33 = vmul.f32 %v1609_v28, %v1593_v10  ;;  %v656_v18 = vmul.f32 %v1609_v28, %v1577_v19  ;;  %v668_v36 = vmul.f32 %v1609_v28, %v1583_v38  ;;  %v650_v46 = vmul.f32 %v646_v30, %v454_v12  ;;  %v708_v30 = vpop.permute.xlu0 %707 }
 0x1f8   :  { %v1611_v27 = vpop.eup %1610  ;;  %v651_v2 = vmul.f32 %v647_v31, %v454_v12  ;;  %v659_v13 = vmul.f32 %v655_v29, %v455_v17  ;;  %v658_v44 = vmul.f32 %v654_v34, %v455_v17  ;;  %v680_v19 = vmul.f32 %v1609_v28, %v1601_v60  ;;  %v704_v28 = vpop.permute.xlu1 %703 }
 0x1f9   :  { %v652_v37 = vmul.f32 %v648_v33, %v454_v12  ;;  %v660_v14 = vmul.f32 %v656_v18, %v455_v17  ;;  %v649_v15 = vmul.f32 %v1611_v27, %v1595_v47  ;;  %v657_v45 = vmul.f32 %v1611_v27, %v1597_v52 }
 0x1fa   :  { %v669_v48 = vmul.f32 %v1611_v27, %v1585_v39  ;;  %v681_v50 = vmul.f32 %v1611_v27, %v1603_v0  ;;  %v672_v38 = vmul.f32 %v668_v36, %v456_v35  ;;  %v663_v61 = vadd.f32 %v659_v13, %v651_v2 }
 0x1fb   :  { %v653_v55 = vmul.f32 %v649_v15, %v454_v12  ;;  %v661_v32 = vmul.f32 %v657_v45, %v455_v17  ;;  %v664_v10 = vadd.f32 %v660_v14, %v652_v37  ;;  %v671_v21 = vmul.f32 %v667_v43, %v456_v35  ;;  %v692_v12 = vld [vmem:[#allocation9 + $0x70] sm:$0xff]  ;;  %v696_v29 = vpop.permute.xlu0 %695 }
 0x1fc   :  { %v673_v59 = vmul.f32 %v669_v48, %v456_v35  ;;  %v685_v62 = vmul.f32 %v681_v50, %v457_v42  ;;  %v662_v39 = vadd.f32 %v658_v44, %v650_v46  ;;  %v678_v26 = vmul.f32 %v1605_v9, %v1966_v40  ;;  %v693_v40 = vld [vmem:[#allocation9 + $0x78] sm:$0xff]  ;;  %v936_v9 = vld [vmem:[#allocation9 + $0x80] sm:$0xff]  ;;  %v700_v31 = vpop.permute.xlu1 %699 }
 0x1fd   :  { %v665_v58 = vadd.f32 %v661_v32, %v653_v55  ;;  %v676_v52 = vadd.f32 %v672_v38, %v664_v10  ;;  %v684_v1 = vmul.f32 %v680_v19, %v457_v42  ;;  %v675_v20 = vadd.f32 %v671_v21, %v663_v61 }
 0x1fe   :  { %v670_v25 = vmul.f32 %v666_v57, %v456_v35  ;;  %v683_v23 = vmul.f32 %v679_v63, %v457_v42  ;;  %v682_v8 = vmul.f32 %v678_v26, %v457_v42 }
 0x1ff   :  { %v677_v47 = vadd.f32 %v673_v59, %v665_v58  ;;  %v688_v60 = vadd.f32 %v684_v1, %v676_v52 }
 0x200   :  { %v674_v22 = vadd.f32 %v670_v25, %v662_v39  ;;  %v687_v3 = vadd.f32 %v683_v23, %v675_v20 }
 0x201   :  { %v689_v0 = vadd.f32 %v685_v62, %v677_v47 }
 0x202   :  { %v686_v56 = vadd.f32 %v682_v8, %v674_v22 }
 0x203   :  { %1482 = vmatprep.subr.mxu1 %v689_v0 }
 0x204   :  { %1483 = vmatpush3.msra.mxu1 %v689_v0 }
 0x205   :  { %1484 = vmatprep.subr.mxu1 %v688_v60 }
 0x206   :  { %1485 = vmatpush3.msra.mxu1 %v688_v60 }
 0x207   :  { %1486 = vmatprep.subr.mxu1 %v687_v3 }
 0x208   :  { %1487 = vmatpush3.msra.mxu1 %v687_v3 }
 0x209   :  { %1488 = vmatprep.subr.mxu1 %v686_v56 }
 0x20a   :  { %1489 = vmatpush3.msra.mxu1 %v686_v56 }
 0x20b   :  { %1491 = vmatmul.mubr.msk.f32.vlgmr.msra.gmra.mxu1 %vm232_vm0, %v691_v11 }
 0x20c   :  { %1493 = vmatprep.mubr.msk.f32.mxu1 %vm232_vm0, %v692_v12 }
 0x20f   :  { %1494 = vmatmul.mubr.msk.f32.gmra.mxu1 %vm232_vm0, %v693_v40 }
 0x210   :  { %1504 = vmatprep.mubr.msk.f32.mxu1 %vm232_vm0, %v936_v9 }
 0x2cb   :  { %v1492_v17 = vpop.f32.mrf.mxu1 }
 0x2cc   :  { %v794_v33 = vadd.f32 %v1492_v17, %v700_v31 }
 0x2cd   :  { %v788_v34 = vpop.f32.mrf.mxu1 }
 0x2ce   :  { %v1981_v18 = vadd.f32 %v794_v33, %v1872_v53  ;;  %v789_v27 = vadd.f32 %v788_v34, %v696_v29 }
 0x2cf   :  { %v1495_v2 = vpop.f32.mrf.mxu1 }
 0x2d0   :  { %v817_v4 = vrot.slane %v1981_v18, 4  ;;  %v841_v6 = vmul.f32 %v1981_v18, %v1981_v18  ;;  %v1987_v7 = vadd.f32 %v789_v27, %v1876_v54  ;;  %v804_v5 = vadd.f32 %v1495_v2, %v708_v30 }
 0x2d1   :  { %v798_v35 = vpop.f32.mrf.mxu1 }
 0x2d2   :  { %v818_v13 = vadd.f32 %v817_v4, %v1981_v18  ;;  %v850_v36 = vrot.slane %v841_v6, 4  ;;  %v811_v37 = vrot.slane %v1987_v7, 4  ;;  %v840_v53 = vmul.f32 %v1987_v7, %v1987_v7 }
 0x2d3   :  { %v1994_v14 = vadd.f32 %v804_v5, %v1865_v49  ;;  %v799_v41 = vadd.f32 %v798_v35, %v704_v28 }
 0x2d4   :  { %v851_v15 = vadd.f32 %v850_v36, %v841_v6  ;;  %v812_v45 = vadd.f32 %v811_v37, %v1987_v7  ;;  %v844_v46 = vrot.slane %v840_v53, 4  ;;  %v819_v54 = vrot.slane %v818_v13, 2 }
 0x2d5   :  { %v829_v48 = vrot.slane %v1994_v14, 4  ;;  %v843_v50 = vmul.f32 %v1994_v14, %v1994_v14  ;;  %v2001_v43 = vadd.f32 %v799_v41, %v1868_v51 }
 0x2d6   :  { %v852_v44 = vrot.slane %v851_v15, 2  ;;  %v845_v55 = vadd.f32 %v844_v46, %v840_v53  ;;  %v820_v32 = vadd.f32 %v819_v54, %v818_v13  ;;  %v813_v10 = vrot.slane %v812_v45, 2 }
 0x2d7   :  { %v830_v49 = vadd.f32 %v829_v48, %v1994_v14  ;;  %v862_v42 = vrot.slane %v843_v50, 4  ;;  %v823_v19 = vrot.slane %v2001_v43, 4  ;;  %v842_v57 = vmul.f32 %v2001_v43, %v2001_v43 }
 0x2d8   :  { %v853_v58 = vadd.f32 %v852_v44, %v851_v15  ;;  %v846_v59 = vrot.slane %v845_v55, 2  ;;  %v821_v38 = vrot.slane %v820_v32, 1  ;;  %v814_v61 = vadd.f32 %v813_v10, %v812_v45  ;;  %v910_v45 = vpop.permute.xlu1 %909 }
 0x2d9   :  { %v863_v62 = vadd.f32 %v862_v42, %v843_v50  ;;  %v824_v51 = vadd.f32 %v823_v19, %v2001_v43  ;;  %v856_v63 = vrot.slane %v842_v57, 4  ;;  %v831_v47 = vrot.slane %v830_v49, 2 }
 0x2da   :  { %v847_v52 = vadd.f32 %v846_v59, %v845_v55  ;;  %v822_v21 = vadd.f32 %v821_v38, %v820_v32  ;;  %v854_v39 = vrot.slane %v853_v58, 1  ;;  %v815_v26 = vrot.slane %v814_v61, 1 }
 0x2db   :  { %v864_v0 = vrot.slane %v863_v62, 2  ;;  %v857_v1 = vadd.f32 %v856_v63, %v842_v57  ;;  %v832_v20 = vadd.f32 %v831_v47, %v830_v49  ;;  %v825_v25 = vrot.slane %v824_v51, 2  ;;  %v906_v49 = vpop.permute.xlu0 %905 }
 0x2dc   :  { %v837_v60 = vmul.f32 0.125, %v822_v21  ;;  %v855_v23 = vadd.f32 %v854_v39, %v853_v58  ;;  %v816_v22 = vadd.f32 %v815_v26, %v814_v61  ;;  %v848_v3 = vrot.slane %v847_v52, 1  ;;  %v930_v32 = vpop.permute.xlu1 %929 }
 0x2dd   :  { %v865_v8 = vadd.f32 %v864_v0, %v863_v62  ;;  %v858_v56 = vrot.slane %v857_v1, 2  ;;  %v833_v11 = vrot.slane %v832_v20, 1  ;;  %v826_v12 = vadd.f32 %v825_v25, %v824_v51 }
 0x2de   :  { %v869_v40 = vmul.f32 0.125, %v855_v23  ;;  %v873_v9 = vmul.f32 %v837_v60, %v837_v60  ;;  %v836_v16 = vmul.f32 0.125, %v816_v22  ;;  %v849_v33 = vadd.f32 %v848_v3, %v847_v52  ;;  %v937_v23 = vld [vmem:[#allocation9 + $0x88] sm:$0xff]  ;;  %v938_v22 = vld [vmem:[#allocation9 + $0x90] sm:$0xff]  ;;  %v939_v3 = vld [vmem:[#allocation9 + $0x98] sm:$0xff] }
 0x2df   :  { %v859_v28 = vadd.f32 %v858_v56, %v857_v1  ;;  %v834_v30 = vadd.f32 %v833_v11, %v832_v20  ;;  %v866_v31 = vrot.slane %v865_v8, 1  ;;  %v827_v17 = vrot.slane %v826_v12, 1  ;;  %v926_v21 = vpop.permute.xlu0 %925  ;;  %v1628_v11 = vld [vmem:[#allocation10 + $0x8] sm:$0xff] }
 0x2e0   :  { %v877_v29 = vsub.f32 %v869_v40, %v873_v9  ;;  %v872_v34 = vmul.f32 %v836_v16, %v836_v16  ;;  %v868_v5 = vmul.f32 0.125, %v849_v33  ;;  %v902_v10 = vpop.permute.xlu1 %901  ;;  %v881_v58 = vsub.f32 %v1981_v18, %v837_v60  ;;  %v1630_v40 = vld [vmem:[#allocation10 + $0x18] sm:$0xff]  ;;  %v2032_v9 = vld [vmem:[#allocation10] sm:$0xff] }
 0x2e1   :  { %v839_v27 = vmul.f32 0.125, %v834_v30  ;;  %v867_v2 = vadd.f32 %v866_v31, %v865_v8  ;;  %v828_v4 = vadd.f32 %v827_v17, %v826_v12  ;;  %v860_v6 = vrot.slane %v859_v28, 1  ;;  %v1057_v8 = vld [vmem:[#allocation9 + $0xa0] sm:$0xff]  ;;  %v1629_v12 = vld [vmem:[#allocation10 + $0x10] sm:$0xff] }
 0x2e2   :  { %v885_v37 = vadd.f32 1e-05, %v877_v29  ;;  %v876_v41 = vsub.f32 %v868_v5, %v872_v34  ;;  %v880_v63 = vsub.f32 %v1987_v7, %v836_v16  ;;  %v1776_v56 = vmov 5  }
 0x2e3   :  { %v871_v35 = vmul.f32 0.125, %v867_v2  ;;  %v875_v13 = vmul.f32 %v839_v27, %v839_v27  ;;  %v838_v36 = vmul.f32 0.125, %v828_v4  ;;  %v861_v53 = vadd.f32 %v860_v6, %v859_v28  ;;  %1564 = vset.pattern.permute.xlu0 %v1776_v56  ;;  %1565 = vset.pattern.permute.xlu1 %v1776_v56 }
 0x2e4   :  { %v884_v48 = vadd.f32 1e-05, %v876_v41  ;;  %1612 = vrsqrt.f32 %v885_v37  ;;  %v883_v19 = vsub.f32 %v1994_v14, %v839_v27  ;;  %v898_v61 = vpop.permute.xlu1 %897  ;;  %1066 = vperm.xlu0 %1564, %v1628_v11   ;;  %1070 = vperm.xlu1 %1565, %v1629_v12   ;;  %v1777_v16 = vmov 8  }
 0x2e5   :  { %v879_v15 = vsub.f32 %v871_v35, %v875_v13  ;;  %v874_v46 = vmul.f32 %v838_v36, %v838_v36  ;;  %v870_v54 = vmul.f32 0.125, %v861_v53  ;;  %v882_v51 = vsub.f32 %v2001_v43, %v838_v36  ;;  %v918_v43 = vpop.permute.xlu0 %917 }
 0x2e6   :  { %v1778_v28 = vmov 9   ;;  %v1779_v30 = vmov 10  }
 0x2e7   :  { %v887_v50 = vadd.f32 1e-05, %v879_v15  ;;  %v878_v44 = vsub.f32 %v870_v54, %v874_v46  ;;  %v1058_v15 = vld [vmem:[#allocation9 + $0xa8] sm:$0xff]  ;;  %v1060_v46 = vld [vmem:[#allocation9 + $0xb8] sm:$0xff] }
 0x2e8   :  { %v922_v20 = vpop.permute.xlu1 %921  ;;  %1074 = vperm.xlu0 %1564, %v1630_v40   ;;  %1062 = vperm.xlu1 %1565, %v2032_v9  }
 0x2e9   :  { %1614 = vrsqrt.f32 %v887_v50  ;;  %v886_v55 = vadd.f32 1e-05, %v878_v44  ;;  %v950_v27 = vpop.permute.xlu0 %949 }
 0x2ea   :  { %1616 = vrsqrt.f32 %v884_v48 }
 0x2eb   :  { %1618 = vrsqrt.f32 %v886_v55 }
 0x2ec   :  { %1566 = vset.pattern.permute.xlu1 %v1777_v16  ;;  %1567 = vset.pattern.permute.xlu0 %v1777_v16  ;;  %v954_v31 = vpop.permute.xlu1 %953 }
 0x2ed   :  { %1267 = vperm.xlu1 %1566, %v1628_v11   ;;  %1271 = vperm.xlu0 %1567, %v1629_v12  }
 0x2f0   :  { %v946_v17 = vpop.permute.xlu1 %945 }
 0x2f1   :  { %v1613_v42 = vpop.eup %1612  ;;  %1263 = vperm.xlu1 %1566, %v2032_v9   ;;  %1568 = vset.pattern.permute.xlu0 %v1778_v28 }
 0x2f2   :  { %v893_v62 = vmul.f32 %v1613_v42, %v881_v58  ;;  %1287 = vperm.xlu0 %1568, %v1628_v11  }
 0x2f4   :  { %v913_v1 = vmul.f32 %v902_v10, %v893_v62  ;;  %v942_v4 = vpop.permute.xlu1 %941 }
 0x2f5   :  { %1275 = vperm.xlu1 %1566, %v1630_v40  }
 0x2f6   :  { %v1615_v57 = vpop.eup %1614  ;;  %v2018_v60 = vadd.f32 %v922_v20, %v913_v1  ;;  %1295 = vperm.xlu0 %1568, %v1630_v40  }
 0x2f7   :  { %v1617_v59 = vpop.eup %1616  ;;  %v895_v38 = vmul.f32 %v1615_v57, %v883_v19 }
 0x2f8   :  { %v1619_v47 = vpop.eup %1618  ;;  %v892_v26 = vmul.f32 %v1617_v59, %v880_v63 }
 0x2f9   :  { %v915_v52 = vmul.f32 %v910_v45, %v895_v38  ;;  %v894_v39 = vmul.f32 %v1619_v47, %v882_v51  ;;  %1569 = vset.pattern.permute.xlu1 %v1778_v28  ;;  %v1059_v45 = vld [vmem:[#allocation9 + $0xb0] sm:$0xff] }
 0x2fa   :  { %v912_v18 = vmul.f32 %v898_v61, %v892_v26  ;;  %1291 = vperm.xlu1 %1569, %v1629_v12   ;;  %1571 = vset.pattern.permute.xlu0 %v1779_v30 }
 0x2fb   :  { %v2012_v0 = vadd.f32 %v930_v32, %v915_v52  ;;  %v914_v14 = vmul.f32 %v906_v49, %v894_v39  ;;  %1311 = vperm.xlu0 %1571, %v1629_v12  }
 0x2fc   :  { %v2022_v7 = vadd.f32 %v918_v43, %v912_v18 }
 0x2fd   :  { %1496 = vmatprep.subr.mxu1 %v2012_v0  ;;  %v2015_v25 = vadd.f32 %v926_v21, %v914_v14 }
 0x2fe   :  { %1497 = vmatpush3.msra.mxu1 %v2012_v0  ;;  %1283 = vperm.xlu1 %1569, %v2032_v9  }
 0x2ff   :  { %1498 = vmatprep.subr.mxu1 %v2015_v25 }
 0x300   :  { %1499 = vmatpush3.msra.mxu1 %v2015_v25 }
 0x301   :  { %1500 = vmatprep.subr.mxu1 %v2018_v60 }
 0x302   :  { %1501 = vmatpush3.msra.mxu1 %v2018_v60  ;;  %1570 = vset.pattern.permute.xlu1 %v1779_v30 }
 0x303   :  { %1502 = vmatprep.subr.mxu1 %v2022_v7  ;;  %1307 = vperm.xlu1 %1570, %v1628_v11  }
 0x304   :  { %1503 = vmatpush3.msra.mxu1 %v2022_v7 }
 0x305   :  { %1505 = vmatmul.mubr.msk.f32.vlgmr.msra.gmra.mxu1 %vm232_vm0, %v937_v23 }
 0x306   :  { %1507 = vmatprep.mubr.msk.f32.mxu1 %vm232_vm0, %v938_v22 }
 0x307   :  { %1303 = vperm.xlu1 %1570, %v2032_v9  }
 0x309   :  { %1508 = vmatmul.mubr.msk.f32.gmra.mxu1 %vm232_vm0, %v939_v3 }
 0x30a   :  { %1518 = vmatprep.mubr.msk.f32.mxu1 %vm232_vm0, %v1057_v8 }
 0x30b   :  { %1315 = vperm.xlu1 %1570, %v1630_v40  }
 0x35f   :  { %v1071_v54 = vpop.permute.xlu1 %1070  ;;  %v1067_v48 = vpop.permute.xlu0 %1066 }
 0x363   :  { %v1063_v55 = vpop.permute.xlu1 %1062  ;;  %v1075_v42 = vpop.permute.xlu0 %1074 }
 0x368   :  { %v2068_v11 = vpop.permute.xlu1 %1267 }
 0x3c5   :  { %v1506_v29 = vpop.f32.mrf.mxu1 }
 0x3c6   :  { %v1040_v5 = vadd.f32 %v1506_v29, %v946_v17 }
 0x3c7   :  { %v1034_v33 = vpop.f32.mrf.mxu1 }
 0x3c8   :  { %v1035_v36 = vadd.f32 %v1034_v33, %v942_v4  ;;  %v1054_v53 = vmax.f32 %v1040_v5, 0.0 }
 0x3c9   :  { %v1509_v34 = vpop.f32.mrf.mxu1 }
 0x3ca   :  { %v1050_v2 = vadd.f32 %v1509_v34, %v954_v31  ;;  %v1053_v41 = vmax.f32 %v1035_v36, 0.0 }
 0x3cb   :  { %v1044_v6 = vpop.f32.mrf.mxu1 }
 0x3cc   :  { %v1056_v35 = vmax.f32 %v1050_v2, 0.0  ;;  %v1045_v13 = vadd.f32 %v1044_v6, %v950_v27 }
 0x3ce   :  { %v1055_v37 = vmax.f32 %v1045_v13, 0.0  ;;  %1510 = vmatprep.subr.mxu1 %v1056_v35 }
 0x3cf   :  { %1511 = vmatpush3.msra.mxu1 %v1056_v35 }
 0x3d0   :  { %1512 = vmatprep.subr.mxu1 %v1055_v37 }
 0x3d1   :  { %1513 = vmatpush3.msra.mxu1 %v1055_v37 }
 0x3d2   :  { %1514 = vmatprep.subr.mxu1 %v1054_v53 }
 0x3d3   :  { %1515 = vmatpush3.msra.mxu1 %v1054_v53 }
 0x3d4   :  { %1516 = vmatprep.subr.mxu1 %v1053_v41 }
 0x3d5   :  { %1517 = vmatpush3.msra.mxu1 %v1053_v41 }
 0x3d6   :  { %1519 = vmatmul.mubr.msk.f32.vlgmr.msra.gmra.mxu1 %vm232_vm0, %v1058_v15  ;;  %v1264_v15 = vpop.permute.xlu1 %1263 }
 0x3d7   :  { %1521 = vmatprep.mubr.msk.f32.mxu1 %vm232_vm0, %v1059_v45 }
 0x3da   :  { %1522 = vmatmul.mubr.msk.f32.gmra.mxu1 %vm232_vm0, %v1060_v46 }
 0x496   :  { %v1520_v50 = vpop.f32.mrf.mxu1 }
 0x497   :  { %v1161_v44 = vadd.f32 %v1520_v50, %v1067_v48 }
 0x498   :  { %v1155_v32 = vpop.f32.mrf.mxu1 }
 0x499   :  { %v2042_v10 = vadd.f32 %v1161_v44, %v2018_v60  ;;  %v1156_v49 = vadd.f32 %v1155_v32, %v1063_v55 }
 0x49a   :  { %v1523_v19 = vpop.f32.mrf.mxu1 }
 0x49b   :  { %v1184_v57 = vrot.slane %v2042_v10, 4  ;;  %v1207_v58 = vmul.f32 %v2042_v10, %v2042_v10  ;;  %v2048_v59 = vadd.f32 %v1156_v49, %v2022_v7  ;;  %v1171_v38 = vadd.f32 %v1523_v19, %v1075_v42 }
 0x49c   :  { %v1165_v61 = vpop.f32.mrf.mxu1 }
 0x49d   :  { %v1185_v62 = vadd.f32 %v1184_v57, %v2042_v10  ;;  %v1216_v51 = vrot.slane %v1207_v58, 4  ;;  %v1178_v63 = vrot.slane %v2048_v59, 4  ;;  %v1206_v47 = vmul.f32 %v2048_v59, %v2048_v59 }
 0x49e   :  { %v2055_v52 = vadd.f32 %v1171_v38, %v2012_v0  ;;  %v1166_v21 = vadd.f32 %v1165_v61, %v1071_v54 }
 0x49f   :  { %v1217_v39 = vadd.f32 %v1216_v51, %v1207_v58  ;;  %v1179_v26 = vadd.f32 %v1178_v63, %v2048_v59  ;;  %v1210_v1 = vrot.slane %v1206_v47, 4  ;;  %v1186_v14 = vrot.slane %v1185_v62, 2 }
 0x4a0   :  { %v1196_v20 = vrot.slane %v2055_v52, 4  ;;  %v1209_v18 = vmul.f32 %v2055_v52, %v2055_v52  ;;  %v2062_v43 = vadd.f32 %v1166_v21, %v2015_v25 }
 0x4a1   :  { %v1218_v60 = vrot.slane %v1217_v39, 2  ;;  %v1211_v7 = vadd.f32 %v1210_v1, %v1206_v47  ;;  %v1187_v23 = vadd.f32 %v1186_v14, %v1185_v62  ;;  %v1180_v22 = vrot.slane %v1179_v26, 2 }
 0x4a2   :  { %v1197_v0 = vadd.f32 %v1196_v20, %v2055_v52  ;;  %v1228_v3 = vrot.slane %v1209_v18, 4  ;;  %v1190_v8 = vrot.slane %v2062_v43, 4  ;;  %v1208_v56 = vmul.f32 %v2062_v43, %v2062_v43 }
 0x4a3   :  { %v1219_v12 = vadd.f32 %v1218_v60, %v1217_v39  ;;  %v1212_v40 = vrot.slane %v1211_v7, 2  ;;  %v1188_v16 = vrot.slane %v1187_v23, 1  ;;  %v1181_v28 = vadd.f32 %v1180_v22, %v1179_v26  ;;  %v1276_v26 = vpop.permute.xlu1 %1275 }
 0x4a4   :  { %v1229_v25 = vadd.f32 %v1228_v3, %v1209_v18  ;;  %v1191_v30 = vadd.f32 %v1190_v8, %v2062_v43  ;;  %v1222_v31 = vrot.slane %v1208_v56, 4  ;;  %v1198_v17 = vrot.slane %v1197_v0, 2 }
 0x4a5   :  { %v1213_v29 = vadd.f32 %v1212_v40, %v1211_v7  ;;  %v1189_v33 = vadd.f32 %v1188_v16, %v1187_v23  ;;  %v1220_v34 = vrot.slane %v1219_v12, 1  ;;  %v1182_v27 = vrot.slane %v1181_v28, 1 }
 0x4a6   :  { %v1230_v2 = vrot.slane %v1229_v25, 2  ;;  %v1223_v4 = vadd.f32 %v1222_v31, %v1208_v56  ;;  %v1199_v6 = vadd.f32 %v1198_v17, %v1197_v0  ;;  %v1192_v5 = vrot.slane %v1191_v30, 2  ;;  %v1272_v56 = vpop.permute.xlu0 %1271 }
 0x4a7   :  { %v1203_v35 = vmul.f32 0.125, %v1189_v33  ;;  %v1221_v13 = vadd.f32 %v1220_v34, %v1219_v12  ;;  %v1183_v36 = vadd.f32 %v1182_v27, %v1181_v28  ;;  %v1214_v37 = vrot.slane %v1213_v29, 1  ;;  %v1292_v22 = vpop.permute.xlu1 %1291 }
 0x4a8   :  { %v1231_v53 = vadd.f32 %v1230_v2, %v1229_v25  ;;  %v1224_v41 = vrot.slane %v1223_v4, 2  ;;  %v1200_v45 = vrot.slane %v1199_v6, 1  ;;  %v1193_v46 = vadd.f32 %v1192_v5, %v1191_v30 }
 0x4a9   :  { %v1235_v54 = vmul.f32 0.125, %v1221_v13  ;;  %v1239_v48 = vmul.f32 %v1203_v35, %v1203_v35  ;;  %v1202_v50 = vmul.f32 0.125, %v1183_v36  ;;  %v1215_v55 = vadd.f32 %v1214_v37, %v1213_v29 }
 0x4aa   :  { %v1225_v44 = vadd.f32 %v1224_v41, %v1223_v4  ;;  %v1201_v32 = vadd.f32 %v1200_v45, %v1199_v6  ;;  %v1232_v49 = vrot.slane %v1231_v53, 1  ;;  %v1194_v57 = vrot.slane %v1193_v46, 1  ;;  %v1288_v30 = vpop.permute.xlu0 %1287 }
 0x4ab   :  { %v1243_v42 = vsub.f32 %v1235_v54, %v1239_v48  ;;  %v1238_v19 = vmul.f32 %v1202_v50, %v1202_v50  ;;  %v1234_v58 = vmul.f32 0.125, %v1215_v55  ;;  %v1284_v8 = vpop.permute.xlu1 %1283  ;;  %v1247_v12 = vsub.f32 %v2042_v10, %v1203_v35 }
 0x4ac   :  { %v1205_v38 = vmul.f32 0.125, %v1201_v32  ;;  %v1233_v61 = vadd.f32 %v1232_v49, %v1231_v53  ;;  %v1226_v62 = vrot.slane %v1225_v44, 1  ;;  %v1195_v63 = vadd.f32 %v1194_v57, %v1193_v46 }
 0x4ad   :  { %v1251_v51 = vadd.f32 1e-05, %v1243_v42  ;;  %v1242_v47 = vsub.f32 %v1234_v58, %v1238_v19  ;;  %v1246_v28 = vsub.f32 %v2048_v59, %v1202_v50 }
 0x4ae   :  { %v1237_v21 = vmul.f32 0.125, %v1233_v61  ;;  %v1241_v39 = vmul.f32 %v1205_v38, %v1205_v38  ;;  %v1204_v1 = vmul.f32 0.125, %v1195_v63  ;;  %v1227_v14 = vadd.f32 %v1226_v62, %v1225_v44  ;;  %v1296_v59 = vpop.permute.xlu0 %1295 }
 0x4af   :  { %1620 = vrsqrt.f32 %v1251_v51  ;;  %v1250_v20 = vadd.f32 1e-05, %v1242_v47  ;;  %v1308_v25 = vpop.permute.xlu1 %1307  ;;  %v1249_v33 = vsub.f32 %v2055_v52, %v1205_v38 }
 0x4b0   :  { %v1245_v18 = vsub.f32 %v1237_v21, %v1241_v39  ;;  %v1236_v60 = vmul.f32 0.125, %v1227_v14  ;;  %v1240_v7 = vmul.f32 %v1204_v1, %v1204_v1  ;;  %v1248_v6 = vsub.f32 %v2062_v43, %v1204_v1 }
 0x4b1   :  { %1622 = vrsqrt.f32 %v1250_v20  ;;  %v1357_v43 = vrot.slane %v2032_v9, %v1855_v24 }
 0x4b2   :  { %v1253_v23 = vadd.f32 1e-05, %v1245_v18  ;;  %v1244_v0 = vsub.f32 %v1236_v60, %v1240_v7  ;;  %v1312_v45 = vpop.permute.xlu0 %1311 }
 0x4b3   :  { %v1304_v36 = vpop.permute.xlu1 %1303 }
 0x4b4   :  { %1624 = vrsqrt.f32 %v1253_v23  ;;  %v1252_v3 = vadd.f32 1e-05, %v1244_v0 }
 0x4b6   :  { %1626 = vrsqrt.f32 %v1252_v3 }
 0x4b7   :  { %v1316_v52 = vpop.permute.xlu1 %1315 }
 0x4bc   :  { %v1621_v40 = vpop.eup %1620 }
 0x4bd   :  { %v1259_v16 = vmul.f32 %v1621_v40, %v1247_v12 }
 0x4be   :  { %v1623_v31 = vpop.eup %1622 }
 0x4bf   :  { %v1279_v17 = vmul.f32 %v2068_v11, %v1259_v16  ;;  %v1258_v29 = vmul.f32 %v1623_v31, %v1246_v28 }
 0x4c1   :  { %v1625_v34 = vpop.eup %1624  ;;  %v1299_v27 = vadd.f32 %v1288_v30, %v1279_v17  ;;  %v1278_v2 = vmul.f32 %v1264_v15, %v1258_v29 }
 0x4c2   :  { %v1261_v4 = vmul.f32 %v1625_v34, %v1249_v33 }
 0x4c3   :  { %v1319_v5 = vmul.f32 %v1308_v25, %v1299_v27  ;;  %v1627_v10 = vpop.eup %1626  ;;  %v1298_v13 = vadd.f32 %v1284_v8, %v1278_v2 }
 0x4c4   :  { %v1281_v35 = vmul.f32 %v1276_v26, %v1261_v4  ;;  %v1260_v37 = vmul.f32 %v1627_v10, %v1248_v6 }
 0x4c5   :  { %1324 = vadd.xlane.f32.xlu0 %v1319_v5  ;;  %v1318_v41 = vmul.f32 %v1304_v36, %v1298_v13 }
 0x4c6   :  { %v1280_v53 = vmul.f32 %v1272_v56, %v1260_v37  ;;  %v1301_v11 = vadd.f32 %v1296_v59, %v1281_v35 }
 0x4c8   :  { %v1300_v46 = vadd.f32 %v1292_v22, %v1280_v53  ;;  %v1321_v54 = vmul.f32 %v1316_v52, %v1301_v11 }
 0x4c9   :  { %1322 = vadd.xlane.f32.xlu0 %v1318_v41 }
 0x4ca   :  { %v1320_v15 = vmul.f32 %v1312_v45, %v1300_v46 }
 0x4cc   :  { %1326 = vadd.xlane.f32.xlu1 %v1320_v15 }
 0x4cd   :  { %1328 = vadd.xlane.f32.xlu0 %v1321_v54 }
 0x4dd   :  { %1359 = vrot.lane.b32.xlu1 %v1357_v43, %s1780_s4 }
 0x54e   :  { %v1325_v48 = vpop.xlane.xlu0 %1324 }
 0x54f   :  { %v1336_v50 = vrot.slane %v1325_v48, 4 }
 0x551   :  { %v1337_v44 = vadd.f32 %v1336_v50, %v1325_v48 }
 0x552   :  { %v1323_v55 = vpop.xlane.xlu0 %1322 }
 0x553   :  { %v1338_v32 = vrot.slane %v1337_v44, 2  ;;  %v1330_v49 = vrot.slane %v1323_v55, 4 }
 0x555   :  { %v1339_v42 = vadd.f32 %v1338_v32, %v1337_v44  ;;  %v1331_v19 = vadd.f32 %v1330_v49, %v1323_v55  ;;  %v1327_v57 = vpop.xlane.xlu1 %1326 }
 0x556   :  { %v1329_v58 = vpop.xlane.xlu0 %1328  ;;  %v1342_v61 = vrot.slane %v1327_v57, 4 }
 0x557   :  { %v1332_v38 = vrot.slane %v1331_v19, 2  ;;  %v1348_v62 = vrot.slane %v1329_v58, 4  ;;  %v1340_v51 = vrot.slane %v1339_v42, 1 }
 0x558   :  { %v1343_v47 = vadd.f32 %v1342_v61, %v1327_v57 }
 0x559   :  { %v1333_v63 = vadd.f32 %v1332_v38, %v1331_v19  ;;  %v1349_v21 = vadd.f32 %v1348_v62, %v1329_v58  ;;  %v1341_v26 = vadd.f32 %v1340_v51, %v1339_v42  ;;  %v1360_v20 = vpop.permute.xlu1 %1359 }
 0x55a   :  { %v1344_v9 = vrot.slane %v1343_v47, 2 }
 0x55b   :  { %v1334_v24 = vrot.slane %v1333_v63, 1  ;;  %v1350_v39 = vrot.slane %v1349_v21, 2  ;;  %v1363_v23 = vadd.f32 %v1360_v20, %v1341_v26 }
 0x55c   :  { %v1345_v1 = vadd.f32 %v1344_v9, %v1343_v47 }
 0x55d   :  { %v1351_v14 = vadd.f32 %v1350_v39, %v1349_v21  ;;  %v1335_v18 = vadd.f32 %v1334_v24, %v1333_v63  ;;  %v1370_v12 = vrot.slane %v1363_v23, 7 }
 0x55e   :  { %v1346_v60 = vrot.slane %v1345_v1, 1 }
 0x55f   :  { %v1352_v7 = vrot.slane %v1351_v14, 1  ;;  %v1362_v3 = vadd.f32 %v1360_v20, %v1335_v18 }
 0x560   :  { %v1347_v0 = vadd.f32 %v1346_v60, %v1345_v1 }
 0x561   :  { %v1353_v22 = vadd.f32 %v1352_v7, %v1351_v14  ;;  %v1372_v28 = vsel %vm1371_vm1, %v1370_v12, %v1362_v3 }
 0x562   :  { %v1364_v8 = vadd.f32 %v1360_v20, %v1347_v0 }
 0x563   :  { %v1365_v56 = vadd.f32 %v1360_v20, %v1353_v22 }
 0x564   :  { %v1373_v40 = vrot.slane %v1364_v8, 6 }
 0x565   :  { %v1376_v16 = vrot.slane %v1365_v56, 5 }
 0x566   :  { %v1375_v25 = vsel %vm1374_vm2, %v1373_v40, %v1372_v28 }
 0x567   :  { %v1378_v30 = vsel %vm1377_vm3, %v1376_v16, %v1375_v25 }
 0x568   :  { %1381 = vst.msk [vmem:[%s2087_s6] sm:$0xf] %vm1380_vm4, %v1378_v30 }
 0x569   :  { %1386 = vsyncpa [#allocation3], 1 }
 0x56a   :  { %1387 = vsyncpa [#allocation5], 1 }
 0x56b   :  { %1388 = vsyncpa [#allocation8], 1 }
 0x56c   :  { %1389 = vsyncpa [#allocation11], 1 }

</bundles_post_ra>
